<compile_context>
chip_gen: v7x
topology: tpu7x:2x2x1
jax: 0.10.0
libtpu: 0.0.40
codegen_flags: <defaults>
</compile_context>

<pallas_src>
import functools

import jax
import jax.numpy as jnp
from jax.experimental import pallas as pl
from jax.experimental.pallas import tpu as pltpu


def _round_up(x, m):
    return ((x + m - 1) // m) * m


@functools.lru_cache(maxsize=1)
def _vmem_cap_bytes():
    # v7x has 64 MiB VMEM per TensorCore; v5e/v6e have 128 MiB.  Query when possible,
    # fall back to a v7x-safe 48 MiB cap.
    try:
        cap = getattr(pltpu.get_tpu_info(), "vmem_capacity_bytes", None)
        if cap:
            return int(min(int(cap) * 3 // 4, 96 * 1024 * 1024))
    except Exception:
        pass
    return 48 * 1024 * 1024


def _vmem_limit_bytes(block_bytes, scratch_bytes=0):
    # Pipeline blocks are double-buffered; give 2x headroom, stay under the chip cap.
    need = 2 * block_bytes + scratch_bytes
    return int(min(max(2 * need, 16 * 1024 * 1024), _vmem_cap_bytes()))


# ---------------------------------------------------------------------------
# 1) in-degree -> symmetric-normalization vector  norm = rsqrt(max(deg, 1))
# ---------------------------------------------------------------------------
def _norm_kernel(adj_ref, norm_ref, deg_acc):
    j = pl.program_id(1)  # src (reduction) axis, last in the grid

    @pl.when(j == 0)
    def _():
        deg_acc[...] = jnp.zeros_like(deg_acc)

    a = adj_ref[...].astype(jnp.float32)          # (tile_n, tile_n), 0/1 exact in bf16
    nchunks = a.shape[1] // 128
    # Lane-dense partial sums: pure VPU adds every step, one XLU reduce at the end.
    partial = a[:, 0:128]
    for c in range(1, nchunks):
        partial = partial + a[:, c * 128:(c + 1) * 128]
    deg_acc[...] += partial

    @pl.when(j == pl.num_programs(1) - 1)
    def _():
        deg = jnp.sum(deg_acc[...], axis=1, keepdims=True)
        norm_ref[...] = jax.lax.rsqrt(jnp.maximum(deg, 1.0))


def _compute_norm(adj_p, tile_n):
    np_ = adj_p.shape[0]
    nd = np_ // tile_n
    csize = jnp.dtype(adj_p.dtype).itemsize
    blk = tile_n * tile_n * csize + tile_n * 4
    scratch = tile_n * 128 * 4
    return pl.pallas_call(
        _norm_kernel,
        out_shape=jax.ShapeDtypeStruct((np_, 1), jnp.float32),
        grid_spec=pltpu.PrefetchScalarGridSpec(
            num_scalar_prefetch=0,
            grid=(nd, nd),
            in_specs=[pl.BlockSpec((tile_n, tile_n), lambda i, j: (i, j))],
            out_specs=pl.BlockSpec((tile_n, 1), lambda i, j: (i, 0)),
            scratch_shapes=[pltpu.VMEM((tile_n, 128), jnp.float32)],
        ),
        compiler_params=pltpu.CompilerParams(
            dimension_semantics=("parallel", "arbitrary"),
            vmem_limit_bytes=_vmem_limit_bytes(blk, scratch),
        ),
        cost_estimate=pl.CostEstimate(
            flops=np_ * np_, transcendentals=np_,
            bytes_accessed=np_ * np_ * csize + np_ * 4),
    )(adj_p)


# ---------------------------------------------------------------------------
# 2) one propagation step:
#    h_out = (norm_dst * (adj @ (norm_src * h)))            [bf16 carry]
#    acc_out = (acc_in + w * h_out_f32) * out_scale          [f32, in-place aliased]
# ---------------------------------------------------------------------------
def _make_prop_kernel(*, w, out_scale, with_acc, write_h):
    def body(adj_ref, h_ref, nsrc_ref, ndst_ref, acc_in_ref, h_out_ref,
             acc_out_ref, mm_acc):
        j = pl.program_id(2)  # src (reduction) axis, last in the grid

        @pl.when(j == 0)
        def _():
            mm_acc[...] = jnp.zeros_like(mm_acc)

        # Fold the src-side D^{-1/2} into h right before the matmul; the adjacency
        # MXU operand stays an exact 0/1 tile (no N^2 scaled-adjacency pass in HBM).
        h_scaled = (h_ref[...].astype(jnp.float32) * nsrc_ref[...]).astype(adj_ref.dtype)
        mm_acc[...] += jnp.dot(adj_ref[...], h_scaled,
                               preferred_element_type=jnp.float32)

        @pl.when(j == pl.num_programs(2) - 1)
        def _():
            h_new = mm_acc[...] * ndst_ref[...]           # dst-side D^{-1/2}
            if write_h:
                h_out_ref[...] = h_new.astype(h_out_ref.dtype)
            if with_acc:
                upd = h_new if w == 1.0 else h_new * w    # fold trivial weights away
                agg = acc_in_ref[...] + upd
                if out_scale != 1.0:                      # single final scale (mean)
                    agg = agg * out_scale
                acc_out_ref[...] = agg.astype(acc_out_ref.dtype)

    if with_acc and write_h:
        def kernel(a, h, ns, nd_, ai, ho, ao, mm):
            body(a, h, ns, nd_, ai, ho, ao, mm)
    elif with_acc:
        def kernel(a, h, ns, nd_, ai, ao, mm):
            body(a, h, ns, nd_, ai, None, ao, mm)
    else:
        def kernel(a, h, ns, nd_, ho, mm):
            body(a, h, ns, nd_, None, ho, None, mm)
    return kernel


def _prop_step(adj_p, h, norm, acc, *, w, out_scale, with_acc, write_h,
               tile_n, tile_f):
    np_, fp = h.shape
    nd, nf = np_ // tile_n, fp // tile_f
    cdt = h.dtype
    csize = jnp.dtype(cdt).itemsize

    kernel = _make_prop_kernel(w=float(w), out_scale=float(out_scale),
                               with_acc=with_acc, write_h=write_h)

    in_specs = [
        pl.BlockSpec((tile_n, tile_n), lambda i, f, j: (i, j)),   # adj (0/1)
        pl.BlockSpec((tile_n, tile_f), lambda i, f, j: (j, f)),   # h
        pl.BlockSpec((tile_n, 1), lambda i, f, j: (j, 0)),        # norm (src side)
        pl.BlockSpec((tile_n, 1), lambda i, f, j: (i, 0)),        # norm (dst side)
    ]
    inputs = [adj_p, h, norm, norm]
    out_shapes, out_specs = [], []
    io_alias = {}

    if write_h:
        out_shapes.append(jax.ShapeDtypeStruct((np_, fp), cdt))   # bf16 carry
        out_specs.append(pl.BlockSpec((tile_n, tile_f), lambda i, f, j: (i, f)))
    if with_acc:
        in_specs.append(pl.BlockSpec((tile_n, tile_f), lambda i, f, j: (i, f)))
        inputs.append(acc)
        acc_out_idx = len(out_shapes)
        out_shapes.append(jax.ShapeDtypeStruct((np_, fp), jnp.float32))
        out_specs.append(pl.BlockSpec((tile_n, tile_f), lambda i, f, j: (i, f)))
        io_alias = {4: acc_out_idx}                               # acc updated in place

    blk = (tile_n * tile_n * csize                # adj
           + tile_n * tile_f * csize              # h
           + 2 * tile_n * 4                       # norms
           + (2 * tile_n * tile_f * 4 if with_acc else 0)
           + (tile_n * tile_f * csize if write_h else 0))
    scratch = tile_n * tile_f * 4

    bytes_accessed = (np_ * np_ * csize * nf          # adj re-fetched per feature tile
                      + np_ * fp * csize * nd         # h re-fetched per dst tile
                      + (2 * np_ * fp * 4 if with_acc else 0)
                      + (np_ * fp * csize if write_h else 0)
                      + 2 * np_ * 4 * nd * nf)

    outs = pl.pallas_call(
        kernel,
        out_shape=tuple(out_shapes),
        grid_spec=pltpu.PrefetchScalarGridSpec(
            num_scalar_prefetch=0,
            grid=(nd, nf, nd),  # (dst_tile, feat_tile, src_tile) -- reduction last
            in_specs=in_specs,
            out_specs=tuple(out_specs),
            scratch_shapes=[pltpu.VMEM((tile_n, tile_f), jnp.float32)],
        ),
        compiler_params=pltpu.CompilerParams(
            dimension_semantics=("parallel", "parallel", "arbitrary"),
            vmem_limit_bytes=_vmem_limit_bytes(blk, scratch),
        ),
        input_output_aliases=io_alias,
        cost_estimate=pl.CostEstimate(
            flops=2 * np_ * np_ * fp + 3 * np_ * fp, transcendentals=0,
            bytes_accessed=int(bytes_accessed)),
    )(*inputs)

    res = list(outs) if isinstance(outs, (tuple, list)) else [outs]
    idx = 0
    h_out = None
    acc_out = None
    if write_h:
        h_out = res[idx]
        idx += 1
    if with_acc:
        acc_out = res[idx]
    return h_out, acc_out


# ---------------------------------------------------------------------------
# public wrapper
# ---------------------------------------------------------------------------
def _pick_tiles(n, f, tile_n, tile_f):
    assert tile_n % 128 == 0 and tile_f % 128 == 0
    np_min = _round_up(max(n, 1), 128)
    tn = min(tile_n, np_min)
    # Prefer >= 2 dst tiles so the "parallel" dst axis can feed both v7x TensorCores.
    if tn >= np_min and np_min >= 256 and (np_min // 2) % 128 == 0:
        tn = np_min // 2
    fp_min = _round_up(max(f, 1), 128)
    tf = min(tile_f, fp_min)
    return tn, tf


@functools.partial(jax.jit,
                   static_argnames=("k", "aggr", "tile_n", "tile_f", "compute_dtype"))
def rsgc_layer(adj, features, *, k=2, aggr="mean", tile_n=512, tile_f=256,
               compute_dtype=jnp.bfloat16):
    """Pallas-backed RSGCLayer forward.

    adj      : (N, N), adj[dst, src] = 1.0 iff edge src -> dst
    features : (N, F) node features
    """
    n, f = features.shape
    assert adj.shape == (n, n)

    tn, tf = _pick_tiles(n, f, tile_n, tile_f)
    np_ = _round_up(max(n, tn), tn)
    fp = _round_up(max(f, tf), tf)

    # Adjacency is 0/1 -> exact in bf16: halves the N^2 HBM reads of every pass.
    adj_p = jnp.pad(adj.astype(compute_dtype), ((0, np_ - n), (0, np_ - n)))
    x32 = jnp.pad(features.astype(jnp.float32), ((0, np_ - n), (0, fp - f)))

    # Per-step aggregation weights; for 'mean' accumulate unweighted and apply a
    # single 1/(k+1) scale on the last propagation step.
    if aggr == "mean":
        step_w = (1.0,) * k
        final_scale = 1.0 / (k + 1)
    elif aggr == "1/k":
        step_w = tuple(1.0 / (i + 2) for i in range(k))
        final_scale = 1.0
    elif aggr == "none":
        step_w = (1.0,) * k  # unused
        final_scale = 1.0
    else:
        raise ValueError(f"unknown aggr {aggr!r}")

    norm = _compute_norm(adj_p, tn)              # (Np, 1) f32, rsqrt(max(deg,1))

    with_acc = aggr != "none"
    h = x32.astype(compute_dtype)                # bf16 carry between steps
    acc = x32 if with_acc else None              # results[0] with weight 1, f32

    for i in range(k):
        last = (i == k - 1)
        write_h = (not with_acc) or (not last)   # h_k is dead unless aggr == 'none'
        scale = final_scale if last else 1.0
        h_new, acc_new = _prop_step(adj_p, h, norm, acc,
                                    w=step_w[i], out_scale=scale,
                                    with_acc=with_acc, write_h=write_h,
                                    tile_n=tn, tile_f=tf)
        if write_h:
            h = h_new
        if with_acc:
            acc = acc_new

    out_p = acc if with_acc else h
    return out_p.astype(features.dtype)[:n, :f]


# ---------------------------------------------------------------------------
# pure-JAX reference mirroring the PyTorch/DGL semantics
# ---------------------------------------------------------------------------
def _rsgc_reference(adj, features, *, k=2, aggr="mean"):
    degs = jnp.maximum(jnp.sum(adj, axis=1), 1.0)
    norm = jnp.power(degs, -0.5)[:, None]
    h = features
    results = [features]
    for _ in range(k):
        h = h * norm
        h = adj @ h
        h = h * norm
        results.append(h)
    if aggr == "mean":
        return jnp.mean(jnp.stack(results, axis=1), axis=1)
    elif aggr == "1/k":
        out = results[0]
        for i in range(1, len(results)):
            out = out + results[i] / (i + 1)
        return out
    elif aggr == "none":
        return results[-1]
    raise ValueError(aggr)


if __name__ == "__main__":
    key = jax.random.PRNGKey(0)
    k_adj, k_feat = jax.random.split(key)

    # Small interaction graph: N = (items + users) nodes, F-dim embeddings.
    n_nodes, n_feat = 200, 32
    adj = (jax.random.uniform(k_adj, (n_nodes, n_nodes)) < 0.05).astype(jnp.float32)
    features = jax.random.normal(k_feat, (n_nodes, n_feat), dtype=jnp.float32)

    # (aggr, MXU operand dtype, tolerance).  With the norm folded into h the
    # adjacency stays exact even in bf16; only the bf16 h carry is rounded.
    configs = [
        ("mean", jnp.bfloat16, 5e-2),
        ("mean", jnp.float32, 1e-2),
        ("1/k", jnp.float32, 1e-2),
        ("none", jnp.float32, 1e-2),
    ]
    for aggr, cdt, tol in configs:
        out = rsgc_layer(adj, features, k=2, aggr=aggr, compute_dtype=cdt)
        out = jax.block_until_ready(out)
        ref = _rsgc_reference(adj, features, k=2, aggr=aggr)
        assert out.shape == (n_nodes, n_feat)
        assert jnp.allclose(out, ref, atol=tol, rtol=tol), (
            f"mismatch vs reference (aggr={aggr}, dtype={jnp.dtype(cdt).name})")

    print("KERNEL_OK")
</pallas_src>

<mosaic_0001>
module attributes {stable_mosaic.version = 11 : i64} {
  func.func @kernel(%arg0: i32, %arg1: i32, %arg2: i32, %arg3: memref<128x128xbf16, #tpu.memory_space<vmem>>, %arg4: memref<128x128xbf16, #tpu.memory_space<vmem>>, %arg5: memref<128x1xf32, #tpu.memory_space<vmem>>, %arg6: memref<128x1xf32, #tpu.memory_space<vmem>>, %arg7: memref<128x128xf32, #tpu.memory_space<vmem>>, %arg8: memref<128x128xbf16, #tpu.memory_space<vmem>>, %arg9: memref<128x128xf32, #tpu.memory_space<vmem>>, %arg10: memref<128x128xf32, #tpu.memory_space<vmem>>) attributes {dimension_semantics = [#tpu.dimension_semantics<parallel>, #tpu.dimension_semantics<parallel>, #tpu.dimension_semantics<arbitrary>], iteration_bounds = array<i64: 2, 1, 2>, scalar_prefetch = 0 : i64, scratch_operands = 1 : i64, tpu.core_type = #tpu.core_type<tc>, window_params = [{transform_indices = @transform_0, window_bounds = array<i64: 128, 128>}, {transform_indices = @transform_1, window_bounds = array<i64: 128, 128>}, {transform_indices = @transform_2, window_bounds = array<i64: 128, 1>}, {transform_indices = @transform_3, window_bounds = array<i64: 128, 1>}, {transform_indices = @transform_4, window_bounds = array<i64: 128, 128>}, {transform_indices = @transform_5, window_bounds = array<i64: 128, 128>}, {transform_indices = @transform_6, window_bounds = array<i64: 128, 128>}]} {
    %c0_i32 = arith.constant 0 : i32
    %0 = arith.cmpi eq, %arg2, %c0_i32 : i32
    %1 = arith.extui %0 : i1 to i32
    %c0_i32_0 = arith.constant 0 : i32
    %2 = arith.cmpi ne, %1, %c0_i32_0 : i32
    scf.if %2 {
      %cst_11 = arith.constant 0.000000e+00 : f32
      %17 = vector.broadcast %cst_11 : f32 to vector<128x128xf32>
      %c0_12 = arith.constant 0 : index
      %c0_13 = arith.constant 0 : index
      %18 = vector.load %arg10[%c0_12, %c0_13] : memref<128x128xf32, #tpu.memory_space<vmem>>, vector<128x128xf32>
      tpu.vector_store %arg10[%c0_12, %c0_13], %17 {strides = array<i32>} : memref<128x128xf32, #tpu.memory_space<vmem>>, vector<128x128xf32>,
    } else {
    }
    %c0 = arith.constant 0 : index
    %c0_1 = arith.constant 0 : index
    %3 = vector.load %arg4[%c0, %c0_1] : memref<128x128xbf16, #tpu.memory_space<vmem>>, vector<128x128xbf16>
    %4 = arith.extf %3 : vector<128x128xbf16> to vector<128x128xf32>
    %c0_2 = arith.constant 0 : index
    %c0_3 = arith.constant 0 : index
    %5 = vector.load %arg5[%c0_2, %c0_3] : memref<128x1xf32, #tpu.memory_space<vmem>>, vector<128x1xf32>
    %6 = vector.broadcast %5 : vector<128x1xf32> to vector<128x128xf32>
    %7 = arith.mulf %4, %6 : vector<128x128xf32>
    %8 = arith.truncf %7 : vector<128x128xf32> to vector<128x128xbf16>
    %c0_4 = arith.constant 0 : index
    %c0_5 = arith.constant 0 : index
    %9 = vector.load %arg10[%c0_4, %c0_5] : memref<128x128xf32, #tpu.memory_space<vmem>>, vector<128x128xf32>
    %c0_6 = arith.constant 0 : index
    %c0_7 = arith.constant 0 : index
    %10 = vector.load %arg3[%c0_6, %c0_7] : memref<128x128xbf16, #tpu.memory_space<vmem>>, vector<128x128xbf16>
    %cst = arith.constant dense<0.000000e+00> : vector<128x128xf32>
    %11 = tpu.matmul %10, %8, %cst {dimension_numbers = #tpu.dot_dimension_numbers<[1], [0], [0], [1], [0, 0, 1, 1], [], []>} : vector<128x128xbf16>, vector<128x128xbf16>, vector<128x128xf32> -> vector<128x128xf32>
    %12 = arith.addf %9, %11 : vector<128x128xf32>
    %c0_8 = arith.constant 0 : index
    %c0_9 = arith.constant 0 : index
    %13 = vector.load %arg10[%c0_8, %c0_9] : memref<128x128xf32, #tpu.memory_space<vmem>>, vector<128x128xf32>
    tpu.vector_store %arg10[%c0_8, %c0_9], %12 {strides = array<i32>} : memref<128x128xf32, #tpu.memory_space<vmem>>, vector<128x128xf32>,
    %c1_i32 = arith.constant 1 : i32
    %14 = arith.cmpi eq, %arg2, %c1_i32 : i32
    %15 = arith.extui %14 : i1 to i32
    %c0_i32_10 = arith.constant 0 : i32
    %16 = arith.cmpi ne, %15, %c0_i32_10 : i32
    scf.if %16 {
      %c0_11 = arith.constant 0 : index
      %c0_12 = arith.constant 0 : index
      %17 = vector.load %arg10[%c0_11, %c0_12] : memref<128x128xf32, #tpu.memory_space<vmem>>, vector<128x128xf32>
      %c0_13 = arith.constant 0 : index
      %c0_14 = arith.constant 0 : index
      %18 = vector.load %arg6[%c0_13, %c0_14] : memref<128x1xf32, #tpu.memory_space<vmem>>, vector<128x1xf32>
      %19 = vector.broadcast %18 : vector<128x1xf32> to vector<128x128xf32>
      %20 = arith.mulf %17, %19 : vector<128x128xf32>
      %21 = arith.truncf %20 : vector<128x128xf32> to vector<128x128xbf16>
      %c0_15 = arith.constant 0 : index
      %c0_16 = arith.constant 0 : index
      %22 = vector.load %arg8[%c0_15, %c0_16] : memref<128x128xbf16, #tpu.memory_space<vmem>>, vector<128x128xbf16>
      tpu.vector_store %arg8[%c0_15, %c0_16], %21 {strides = array<i32>} : memref<128x128xbf16, #tpu.memory_space<vmem>>, vector<128x128xbf16>,
      %c0_17 = arith.constant 0 : index
      %c0_18 = arith.constant 0 : index
      %23 = vector.load %arg7[%c0_17, %c0_18] : memref<128x128xf32, #tpu.memory_space<vmem>>, vector<128x128xf32>
      %24 = arith.addf %23, %20 : vector<128x128xf32>
      %c0_19 = arith.constant 0 : index
      %c0_20 = arith.constant 0 : index
      %25 = vector.load %arg9[%c0_19, %c0_20] : memref<128x128xf32, #tpu.memory_space<vmem>>, vector<128x128xf32>
      tpu.vector_store %arg9[%c0_19, %c0_20], %24 {strides = array<i32>} : memref<128x128xf32, #tpu.memory_space<vmem>>, vector<128x128xf32>,
    } else {
    }
    return
  }
  func.func @transform_0(%arg0: i32, %arg1: i32, %arg2: i32) -> (i32, i32) {
    %c0_i32 = arith.constant 0 : i32
    return %arg0, %arg2 : i32, i32
  }
  func.func @transform_1(%arg0: i32, %arg1: i32, %arg2: i32) -> (i32, i32) {
    %c0_i32 = arith.constant 0 : i32
    return %arg2, %arg1 : i32, i32
  }
  func.func @transform_2(%arg0: i32, %arg1: i32, %arg2: i32) -> (i32, i32) {
    %c0_i32 = arith.constant 0 : i32
    %c0_i32_0 = arith.constant 0 : i32
    return %arg2, %c0_i32 : i32, i32
  }
  func.func @transform_3(%arg0: i32, %arg1: i32, %arg2: i32) -> (i32, i32) {
    %c0_i32 = arith.constant 0 : i32
    %c0_i32_0 = arith.constant 0 : i32
    return %arg0, %c0_i32 : i32, i32
  }
  func.func @transform_4(%arg0: i32, %arg1: i32, %arg2: i32) -> (i32, i32) {
    %c0_i32 = arith.constant 0 : i32
    return %arg0, %arg1 : i32, i32
  }
  func.func @transform_5(%arg0: i32, %arg1: i32, %arg2: i32) -> (i32, i32) {
    %c0_i32 = arith.constant 0 : i32
    return %arg0, %arg1 : i32, i32
  }
  func.func @transform_6(%arg0: i32, %arg1: i32, %arg2: i32) -> (i32, i32) {
    %c0_i32 = arith.constant 0 : i32
    return %arg0, %arg1 : i32, i32
  }
}

module attributes {stable_mosaic.version = 11 : i64} {
  func.func @_norm_kernel(%arg0: i32, %arg1: i32, %arg2: memref<128x128xbf16, #tpu.memory_space<vmem>>, %arg3: memref<128x1xf32, #tpu.memory_space<vmem>>, %arg4: memref<128x128xf32, #tpu.memory_space<vmem>>) attributes {dimension_semantics = [#tpu.dimension_semantics<parallel>, #tpu.dimension_semantics<arbitrary>], iteration_bounds = array<i64: 2, 2>, scalar_prefetch = 0 : i64, scratch_operands = 1 : i64, tpu.core_type = #tpu.core_type<tc>, window_params = [{transform_indices = @transform_0, window_bounds = array<i64: 128, 128>}, {transform_indices = @transform_1, window_bounds = array<i64: 128, 1>}]} {
    %c0_i32 = arith.constant 0 : i32
    %0 = arith.cmpi eq, %arg1, %c0_i32 : i32
    %1 = arith.extui %0 : i1 to i32
    %c0_i32_0 = arith.constant 0 : i32
    %2 = arith.cmpi ne, %1, %c0_i32_0 : i32
    scf.if %2 {
      %cst = arith.constant 0.000000e+00 : f32
      %11 = vector.broadcast %cst : f32 to vector<128x128xf32>
      %c0_7 = arith.constant 0 : index
      %c0_8 = arith.constant 0 : index
      %12 = vector.load %arg4[%c0_7, %c0_8] : memref<128x128xf32, #tpu.memory_space<vmem>>, vector<128x128xf32>
      tpu.vector_store %arg4[%c0_7, %c0_8], %11 {strides = array<i32>} : memref<128x128xf32, #tpu.memory_space<vmem>>, vector<128x128xf32>,
    } else {
    }
    %c0 = arith.constant 0 : index
    %c0_1 = arith.constant 0 : index
    %3 = vector.load %arg2[%c0, %c0_1] : memref<128x128xbf16, #tpu.memory_space<vmem>>, vector<128x128xbf16>
    %4 = arith.extf %3 : vector<128x128xbf16> to vector<128x128xf32>
    %c0_2 = arith.constant 0 : index
    %c0_3 = arith.constant 0 : index
    %5 = vector.load %arg4[%c0_2, %c0_3] : memref<128x128xf32, #tpu.memory_space<vmem>>, vector<128x128xf32>
    %6 = arith.addf %5, %4 : vector<128x128xf32>
    %c0_4 = arith.constant 0 : index
    %c0_5 = arith.constant 0 : index
    %7 = vector.load %arg4[%c0_4, %c0_5] : memref<128x128xf32, #tpu.memory_space<vmem>>, vector<128x128xf32>
    tpu.vector_store %arg4[%c0_4, %c0_5], %6 {strides = array<i32>} : memref<128x128xf32, #tpu.memory_space<vmem>>, vector<128x128xf32>,
    %c1_i32 = arith.constant 1 : i32
    %8 = arith.cmpi eq, %arg1, %c1_i32 : i32
    %9 = arith.extui %8 : i1 to i32
    %c0_i32_6 = arith.constant 0 : i32
    %10 = arith.cmpi ne, %9, %c0_i32_6 : i32
    scf.if %10 {
      %c0_7 = arith.constant 0 : index
      %c0_8 = arith.constant 0 : index
      %11 = vector.load %arg4[%c0_7, %c0_8] : memref<128x128xf32, #tpu.memory_space<vmem>>, vector<128x128xf32>
      %cst = arith.constant dense<0.000000e+00> : vector<128xf32>
      %12 = vector.multi_reduction <add>, %11, %cst [1] : vector<128x128xf32> to vector<128xf32>
      %13 = vector.shape_cast %12 : vector<128xf32> to vector<128x1xf32>
      %cst_9 = arith.constant 1.000000e+00 : f32
      %14 = vector.broadcast %cst_9 : f32 to vector<128x1xf32>
      %15 = arith.maximumf %13, %14 : vector<128x1xf32>
      %16 = math.rsqrt %15 : vector<128x1xf32>
      %c0_10 = arith.constant 0 : index
      %c0_11 = arith.constant 0 : index
      %17 = vector.load %arg3[%c0_10, %c0_11] : memref<128x1xf32, #tpu.memory_space<vmem>>, vector<128x1xf32>
      tpu.vector_store %arg3[%c0_10, %c0_11], %16 {strides = array<i32>} : memref<128x1xf32, #tpu.memory_space<vmem>>, vector<128x1xf32>,
    } else {
    }
    return
  }
  func.func @transform_0(%arg0: i32, %arg1: i32) -> (i32, i32) {
    %c0_i32 = arith.constant 0 : i32
    return %arg0, %arg1 : i32, i32
  }
  func.func @transform_1(%arg0: i32, %arg1: i32) -> (i32, i32) {
    %c0_i32 = arith.constant 0 : i32
    %c0_i32_0 = arith.constant 0 : i32
    return %arg0, %c0_i32 : i32, i32
  }
}

module attributes {stable_mosaic.version = 11 : i64} {
  func.func @kernel(%arg0: i32, %arg1: i32, %arg2: i32, %arg3: memref<128x128xbf16, #tpu.memory_space<vmem>>, %arg4: memref<128x128xbf16, #tpu.memory_space<vmem>>, %arg5: memref<128x1xf32, #tpu.memory_space<vmem>>, %arg6: memref<128x1xf32, #tpu.memory_space<vmem>>, %arg7: memref<128x128xf32, #tpu.memory_space<vmem>>, %arg8: memref<128x128xf32, #tpu.memory_space<vmem>>, %arg9: memref<128x128xf32, #tpu.memory_space<vmem>>) attributes {dimension_semantics = [#tpu.dimension_semantics<parallel>, #tpu.dimension_semantics<parallel>, #tpu.dimension_semantics<arbitrary>], iteration_bounds = array<i64: 2, 1, 2>, scalar_prefetch = 0 : i64, scratch_operands = 1 : i64, tpu.core_type = #tpu.core_type<tc>, window_params = [{transform_indices = @transform_0, window_bounds = array<i64: 128, 128>}, {transform_indices = @transform_1, window_bounds = array<i64: 128, 128>}, {transform_indices = @transform_2, window_bounds = array<i64: 128, 1>}, {transform_indices = @transform_3, window_bounds = array<i64: 128, 1>}, {transform_indices = @transform_4, window_bounds = array<i64: 128, 128>}, {transform_indices = @transform_5, window_bounds = array<i64: 128, 128>}]} {
    %c0_i32 = arith.constant 0 : i32
    %0 = arith.cmpi eq, %arg2, %c0_i32 : i32
    %1 = arith.extui %0 : i1 to i32
    %c0_i32_0 = arith.constant 0 : i32
    %2 = arith.cmpi ne, %1, %c0_i32_0 : i32
    scf.if %2 {
      %cst_11 = arith.constant 0.000000e+00 : f32
      %17 = vector.broadcast %cst_11 : f32 to vector<128x128xf32>
      %c0_12 = arith.constant 0 : index
      %c0_13 = arith.constant 0 : index
      %18 = vector.load %arg9[%c0_12, %c0_13] : memref<128x128xf32, #tpu.memory_space<vmem>>, vector<128x128xf32>
      tpu.vector_store %arg9[%c0_12, %c0_13], %17 {strides = array<i32>} : memref<128x128xf32, #tpu.memory_space<vmem>>, vector<128x128xf32>,
    } else {
    }
    %c0 = arith.constant 0 : index
    %c0_1 = arith.constant 0 : index
    %3 = vector.load %arg4[%c0, %c0_1] : memref<128x128xbf16, #tpu.memory_space<vmem>>, vector<128x128xbf16>
    %4 = arith.extf %3 : vector<128x128xbf16> to vector<128x128xf32>
    %c0_2 = arith.constant 0 : index
    %c0_3 = arith.constant 0 : index
    %5 = vector.load %arg5[%c0_2, %c0_3] : memref<128x1xf32, #tpu.memory_space<vmem>>, vector<128x1xf32>
    %6 = vector.broadcast %5 : vector<128x1xf32> to vector<128x128xf32>
    %7 = arith.mulf %4, %6 : vector<128x128xf32>
    %8 = arith.truncf %7 : vector<128x128xf32> to vector<128x128xbf16>
    %c0_4 = arith.constant 0 : index
    %c0_5 = arith.constant 0 : index
    %9 = vector.load %arg9[%c0_4, %c0_5] : memref<128x128xf32, #tpu.memory_space<vmem>>, vector<128x128xf32>
    %c0_6 = arith.constant 0 : index
    %c0_7 = arith.constant 0 : index
    %10 = vector.load %arg3[%c0_6, %c0_7] : memref<128x128xbf16, #tpu.memory_space<vmem>>, vector<128x128xbf16>
    %cst = arith.constant dense<0.000000e+00> : vector<128x128xf32>
    %11 = tpu.matmul %10, %8, %cst {dimension_numbers = #tpu.dot_dimension_numbers<[1], [0], [0], [1], [0, 0, 1, 1], [], []>} : vector<128x128xbf16>, vector<128x128xbf16>, vector<128x128xf32> -> vector<128x128xf32>
    %12 = arith.addf %9, %11 : vector<128x128xf32>
    %c0_8 = arith.constant 0 : index
    %c0_9 = arith.constant 0 : index
    %13 = vector.load %arg9[%c0_8, %c0_9] : memref<128x128xf32, #tpu.memory_space<vmem>>, vector<128x128xf32>
    tpu.vector_store %arg9[%c0_8, %c0_9], %12 {strides = array<i32>} : memref<128x128xf32, #tpu.memory_space<vmem>>, vector<128x128xf32>,
    %c1_i32 = arith.constant 1 : i32
    %14 = arith.cmpi eq, %arg2, %c1_i32 : i32
    %15 = arith.extui %14 : i1 to i32
    %c0_i32_10 = arith.constant 0 : i32
    %16 = arith.cmpi ne, %15, %c0_i32_10 : i32
    scf.if %16 {
      %c0_11 = arith.constant 0 : index
      %c0_12 = arith.constant 0 : index
      %17 = vector.load %arg9[%c0_11, %c0_12] : memref<128x128xf32, #tpu.memory_space<vmem>>, vector<128x128xf32>
      %c0_13 = arith.constant 0 : index
      %c0_14 = arith.constant 0 : index
      %18 = vector.load %arg6[%c0_13, %c0_14] : memref<128x1xf32, #tpu.memory_space<vmem>>, vector<128x1xf32>
      %19 = vector.broadcast %18 : vector<128x1xf32> to vector<128x128xf32>
      %20 = arith.mulf %17, %19 : vector<128x128xf32>
      %c0_15 = arith.constant 0 : index
      %c0_16 = arith.constant 0 : index
      %21 = vector.load %arg7[%c0_15, %c0_16] : memref<128x128xf32, #tpu.memory_space<vmem>>, vector<128x128xf32>
      %22 = arith.addf %21, %20 : vector<128x128xf32>
      %cst_17 = arith.constant 0.333333343 : f32
      %23 = vector.broadcast %cst_17 : f32 to vector<128x128xf32>
      %24 = arith.mulf %22, %23 : vector<128x128xf32>
      %c0_18 = arith.constant 0 : index
      %c0_19 = arith.constant 0 : index
      %25 = vector.load %arg8[%c0_18, %c0_19] : memref<128x128xf32, #tpu.memory_space<vmem>>, vector<128x128xf32>
      tpu.vector_store %arg8[%c0_18, %c0_19], %24 {strides = array<i32>} : memref<128x128xf32, #tpu.memory_space<vmem>>, vector<128x128xf32>,
    } else {
    }
    return
  }
  func.func @transform_0(%arg0: i32, %arg1: i32, %arg2: i32) -> (i32, i32) {
    %c0_i32 = arith.constant 0 : i32
    return %arg0, %arg2 : i32, i32
  }
  func.func @transform_1(%arg0: i32, %arg1: i32, %arg2: i32) -> (i32, i32) {
    %c0_i32 = arith.constant 0 : i32
    return %arg2, %arg1 : i32, i32
  }
  func.func @transform_2(%arg0: i32, %arg1: i32, %arg2: i32) -> (i32, i32) {
    %c0_i32 = arith.constant 0 : i32
    %c0_i32_0 = arith.constant 0 : i32
    return %arg2, %c0_i32 : i32, i32
  }
  func.func @transform_3(%arg0: i32, %arg1: i32, %arg2: i32) -> (i32, i32) {
    %c0_i32 = arith.constant 0 : i32
    %c0_i32_0 = arith.constant 0 : i32
    return %arg0, %c0_i32 : i32, i32
  }
  func.func @transform_4(%arg0: i32, %arg1: i32, %arg2: i32) -> (i32, i32) {
    %c0_i32 = arith.constant 0 : i32
    return %arg0, %arg1 : i32, i32
  }
  func.func @transform_5(%arg0: i32, %arg1: i32, %arg2: i32) -> (i32, i32) {
    %c0_i32 = arith.constant 0 : i32
    return %arg0, %arg1 : i32, i32
  }
}

</mosaic_0001>

<bundles_post_ra>
// kernel: rsgc_layer.3
= control target key start
LH: loop header
LB: loop body
LE: loop exit
PB: predicated region body
PF: predicated region fallthrough
CT: control target
= control target key end

     0   :  { %s726_s6 = smov 0   ;;  %s728_s7 = smov 0   ;;  %s878_s0 = inlined_call_operand.vmem [shape: bf16[256,256], index: 0, kind: input, shape index: {}]   ;;  %s879_s1 = inlined_call_operand.vmem [shape: f32[256,1], index: 1, kind: output, shape index: {}]  }
   0x1   :  { %s730_s8 = smov 0   ;;  %s732_s9 = smov 0  }
   0x2   :  { %s734_s10 = smov 0   ;;  %s736_s11 = smov 0  }
   0x3   :  { %s738_s12 = smov 0  }
   0x4 LB: > { %s20_s13 = sadd.s32 1, %s705_s10  ;;  %s23_s14 = sadd.s32 1, %s709_s11  ;;  %s713_s12 = sphi %s738_s12, %s11_s12   ;;  %s709_s11 = sphi %s736_s11, %s885_s11   ;;  %s705_s10 = sphi %s734_s10, %s884_s10   ;;  %s701_s9 = sphi %s732_s9, %s883_s9   ;;  %s697_s8 = sphi %s730_s8, %s882_s8   ;;  %s693_s7 = sphi %s728_s7, %s881_s7   ;;  %s689_s6 = sphi %s726_s6, %s880_s6  }
   0x5   : > { %p21_p0 = scmp.ge.s32.totalorder %s20_s13, 2  ;;  %p39_p1 = scmp.ne.s32.totalorder %s693_s7, %s689_s6 }
   0x6   : > { %p40_p2 = scmp.eq.s32.totalorder %s713_s12, 0  ;;  %s32_s18 = sadd.s32 1, %s693_s7 }
   0x7   : > { %s887_s13 = smov (%p21_p0, %s20_s13), 0  ;;  %s889_s14 = smov (!%p21_p0, %s23_s14), %s709_s11 }
   0x8   : > { %p41_p3 = por %p40_p2, %p39_p1  ;;  %p25_p4 = scmp.ge.s32.totalorder %s889_s14, 2 }
   0x9   : > { %s28_s15 = ssub.s32 %s705_s10, %s887_s13  ;;  %p517_p6 = scmp.ge.s32.totalorder %s713_s12, 4 }
   0xa   : > { %s891_s14 = smov (%p25_p4, %s889_s14), 0 }
   0xb   : > { %s27_s16 = ssub.s32 %s709_s11, %s891_s14  ;;  %91 = sbr.rel (%p517_p6) target bundleno = 34 (0x22), region = 16 }
   0xc   : > { %s29_s17 = sor.u32 %s28_s15, %s27_s16 }
   0xd   : > { %p30_p5 = scmp.eq.s32.totalorder %s29_s17, 0 }
   0xf   : > { %s777_s19 = scalar_select %p30_p5, %s693_s7, %s32_s18  }
  0x12   : > { %94 = sbr.rel (!%p41_p3) target bundleno = 34 (0x22), region = 20  ;;  %s96_s20 = sand.u32 (%p41_p3), 1, %s693_s7  }
  0x13   : > { %s530_s21 = sshll.u32 (%p41_p3), %s709_s11, 5  ;;  %s518_s22 = sshll.u32 (%p41_p3), %s96_s20, 6 }
  0x14   : > { %s101_s23 = sadd.s32 (%p41_p3), %s705_s10, %s530_s21  ;;  %s98_s28 = scalar_lea.vmem (%p41_p3), [#allocation3], %s518_s22 }
  0x15   : > { %s521_s24 = sshll.u32 (%p41_p3), %s101_s23, 2 }
  0x16   : > { %s786_s27 = scalar_lea.vmem (%p41_p3), %s878_s0, %s521_s24 }
  0x17   : > { %v119_v0 = vld [vmem:[%s786_s27] sm:$0xf] (%p41_p3)  ;;  %v121_v1 = vld [vmem:[%s786_s27 + $0x8] sm:$0xf] (%p41_p3)  ;;  %v123_v2 = vld [vmem:[%s786_s27 + $0x10] sm:$0xf] (%p41_p3) }
  0x18   : > { %120 = vst [vmem:[%s98_s28] sm:$0xf] (%p41_p3), %v119_v0  ;;  %122 = vst [vmem:[%s98_s28 + $0x4] sm:$0xf] (%p41_p3), %v121_v1  ;;  %v125_v3 = vld [vmem:[%s786_s27 + $0x18] sm:$0xf] (%p41_p3) }
  0x19   : > { %124 = vst [vmem:[%s98_s28 + $0x8] sm:$0xf] %v123_v2  ;;  %v127_v4 = vld [vmem:[%s786_s27 + $0x20] sm:$0xf]  ;;  %v129_v5 = vld [vmem:[%s786_s27 + $0x28] sm:$0xf] }
  0x1a   : > { %126 = vst [vmem:[%s98_s28 + $0xc] sm:$0xf] %v125_v3  ;;  %128 = vst [vmem:[%s98_s28 + $0x10] sm:$0xf] %v127_v4  ;;  %v131_v6 = vld [vmem:[%s786_s27 + $0x30] sm:$0xf] }
  0x1b   : > { %130 = vst [vmem:[%s98_s28 + $0x14] sm:$0xf] %v129_v5  ;;  %v133_v7 = vld [vmem:[%s786_s27 + $0x38] sm:$0xf]  ;;  %v135_v8 = vld [vmem:[%s786_s27 + $0x40] sm:$0xf] }
  0x1c   : > { %132 = vst [vmem:[%s98_s28 + $0x18] sm:$0xf] %v131_v6  ;;  %134 = vst [vmem:[%s98_s28 + $0x1c] sm:$0xf] %v133_v7  ;;  %v137_v9 = vld [vmem:[%s786_s27 + $0x48] sm:$0xf] }
  0x1d   : > { %136 = vst [vmem:[%s98_s28 + $0x20] sm:$0xf] %v135_v8  ;;  %v139_v10 = vld [vmem:[%s786_s27 + $0x50] sm:$0xf]  ;;  %v141_v11 = vld [vmem:[%s786_s27 + $0x58] sm:$0xf] }
  0x1e   : > { %138 = vst [vmem:[%s98_s28 + $0x24] sm:$0xf] %v137_v9  ;;  %140 = vst [vmem:[%s98_s28 + $0x28] sm:$0xf] %v139_v10  ;;  %v143_v12 = vld [vmem:[%s786_s27 + $0x60] sm:$0xf] }
  0x1f   : > { %142 = vst [vmem:[%s98_s28 + $0x2c] sm:$0xf] %v141_v11  ;;  %v145_v13 = vld [vmem:[%s786_s27 + $0x68] sm:$0xf]  ;;  %v147_v14 = vld [vmem:[%s786_s27 + $0x70] sm:$0xf] }
  0x20   : > { %144 = vst [vmem:[%s98_s28 + $0x30] sm:$0xf] %v143_v12  ;;  %146 = vst [vmem:[%s98_s28 + $0x34] sm:$0xf] %v145_v13  ;;  %v149_v15 = vld [vmem:[%s786_s27 + $0x78] sm:$0xf] }
  0x21   : > { %148 = vst [vmem:[%s98_s28 + $0x38] sm:$0xf] %v147_v14  ;;  %150 = vst [vmem:[%s98_s28 + $0x3c] sm:$0xf] %v149_v15 }
  0x22 PF: > { %p522_p7 = scmp.ge.s32.totalorder %s713_s12, 1  ;;  %p204_p8 = scmp.lt.s32.totalorder %s713_s12, 5 }
  0x24   : > { %p205_p9 = pnand %p522_p7, %p204_p8 }
  0x25   : > { %s211_s29 = sand.u32 (!%p205_p9), 1, %s689_s6   ;;  %s524_s30 = sshll.u32 (!%p205_p9), %s701_s9, 4 }
  0x26   : > { %208 = sbr.rel (%p205_p9) target bundleno = 254 (0xfe), region = 61  ;;  %s523_s2 = sshll.u32 (!%p205_p9), %s211_s29, 6 }
  0x27   : > { %p232_p10 = scmp.lt.s32.totalorder (!%p205_p9), %s524_s30, 31  ;;  %s813_s16 = scalar_lea.vmem (!%p205_p9), [#allocation3], %s523_s2 }
  0x28   : > { %p526_p11 = scmp.ne.s32.totalorder (!%p205_p9), %s697_s8, 0 }
  0x2d   : > { %s893_s30 = smov (!%p232_p10, %s524_s30), 31  ;;  %240 = sbr.rel (%p526_p11) target bundleno = 55 (0x37), region = 69 }
  0x2e   : > { %s525_s3 = sshll.u32 %s893_s30, 3  ;;  %v715_v16 = vmov (!%p526_p11), 0.0  }
  0x2f   : > { %s811_s15 = scalar_lea.vmem %s879_s1, %s525_s3  ;;  %241 = vst [vmem:[#allocation2] sm:$0xff] (!%p526_p11), %v715_v16  ;;  %242 = vst [vmem:[#allocation2 + $0x8] sm:$0xff] (!%p526_p11), %v715_v16 }
  0x30   : > { %243 = vst [vmem:[#allocation2 + $0x10] sm:$0xff] (!%p526_p11), %v715_v16  ;;  %244 = vst [vmem:[#allocation2 + $0x18] sm:$0xff] (!%p526_p11), %v715_v16 }
  0x31   : > { %245 = vst [vmem:[#allocation2 + $0x20] sm:$0xff] (!%p526_p11), %v715_v16  ;;  %246 = vst [vmem:[#allocation2 + $0x28] sm:$0xff] (!%p526_p11), %v715_v16 }
  0x32   : > { %247 = vst [vmem:[#allocation2 + $0x30] sm:$0xff] (!%p526_p11), %v715_v16  ;;  %248 = vst [vmem:[#allocation2 + $0x38] sm:$0xff] (!%p526_p11), %v715_v16 }
  0x33   : > { %249 = vst [vmem:[#allocation2 + $0x40] sm:$0xff] (!%p526_p11), %v715_v16  ;;  %250 = vst [vmem:[#allocation2 + $0x48] sm:$0xff] (!%p526_p11), %v715_v16 }
  0x34   : > { %251 = vst [vmem:[#allocation2 + $0x50] sm:$0xff] %v715_v16  ;;  %252 = vst [vmem:[#allocation2 + $0x58] sm:$0xff] %v715_v16 }
  0x35   : > { %253 = vst [vmem:[#allocation2 + $0x60] sm:$0xff] %v715_v16  ;;  %254 = vst [vmem:[#allocation2 + $0x68] sm:$0xff] %v715_v16 }
  0x36   : > { %255 = vst [vmem:[#allocation2 + $0x70] sm:$0xff] %v715_v16  ;;  %256 = vst [vmem:[#allocation2 + $0x78] sm:$0xff] %v715_v16 }
  0x37 PF: > { %v532_v17 = vld [vmem:[%s813_s16] sm:$0xff]   ;;  %v563_v22 = vld [vmem:[%s813_s16 + $0x8] sm:$0xff]   ;;  %v564_v27 = vld [vmem:[%s813_s16 + $0x10] sm:$0xff]   ;;  %p527_p12 = scmp.ne.s32.totalorder %s697_s8, 1 }
  0x38   : > { %v533_v20 = vunpack.c.l.bf16 %v532_v17  ;;  %v534_v21 = vunpack.c.h.bf16 %v532_v17  ;;  %v537_v25 = vunpack.c.l.bf16 %v563_v22  ;;  %v538_v26 = vunpack.c.h.bf16 %v563_v22  ;;  %v565_v34 = vld [vmem:[%s813_s16 + $0x18] sm:$0xff]   ;;  %v566_v41 = vld [vmem:[%s813_s16 + $0x20] sm:$0xff]   ;;  %v567_v48 = vld [vmem:[%s813_s16 + $0x28] sm:$0xff]  }
  0x39   : > { %v289_v18 = vld [vmem:[#allocation2] sm:$0xff]  ;;  %v290_v19 = vld [vmem:[#allocation2 + $0x8] sm:$0xff]  ;;  %v541_v32 = vunpack.c.l.bf16 %v564_v27  ;;  %v542_v33 = vunpack.c.h.bf16 %v564_v27  ;;  %v545_v39 = vunpack.c.l.bf16 %v565_v34  ;;  %v546_v40 = vunpack.c.h.bf16 %v565_v34  ;;  %v568_v55 = vld [vmem:[%s813_s16 + $0x30] sm:$0xff]  }
  0x3a   : > { %v291_v23 = vld [vmem:[#allocation2 + $0x10] sm:$0xff]  ;;  %v292_v24 = vld [vmem:[#allocation2 + $0x18] sm:$0xff]  ;;  %v305_v30 = vadd.f32 %v533_v20, %v289_v18  ;;  %v306_v31 = vadd.f32 %v534_v21, %v290_v19  ;;  %v549_v46 = vunpack.c.l.bf16 %v566_v41  ;;  %v550_v47 = vunpack.c.h.bf16 %v566_v41 }
  0x3b   : > { %v293_v28 = vld [vmem:[#allocation2 + $0x20] sm:$0xff]  ;;  %v294_v29 = vld [vmem:[#allocation2 + $0x28] sm:$0xff]  ;;  %v307_v37 = vadd.f32 %v537_v25, %v291_v23  ;;  %v308_v38 = vadd.f32 %v538_v26, %v292_v24  ;;  %v553_v53 = vunpack.c.l.bf16 %v567_v48  ;;  %v554_v54 = vunpack.c.h.bf16 %v567_v48  ;;  %v569_v62 = vld [vmem:[%s813_s16 + $0x38] sm:$0xff]  }
  0x3c   : > { %v295_v35 = vld [vmem:[#allocation2 + $0x30] sm:$0xff]  ;;  %v296_v36 = vld [vmem:[#allocation2 + $0x38] sm:$0xff]  ;;  %321 = vst [vmem:[#allocation2] sm:$0xff] %v305_v30  ;;  %322 = vst [vmem:[#allocation2 + $0x8] sm:$0xff] %v306_v31  ;;  %v309_v44 = vadd.f32 %v541_v32, %v293_v28  ;;  %v310_v45 = vadd.f32 %v542_v33, %v294_v29  ;;  %v557_v60 = vunpack.c.l.bf16 %v568_v55  ;;  %v558_v61 = vunpack.c.h.bf16 %v568_v55 }
  0x3d   : > { %v297_v42 = vld [vmem:[#allocation2 + $0x40] sm:$0xff]  ;;  %v298_v43 = vld [vmem:[#allocation2 + $0x48] sm:$0xff]  ;;  %323 = vst [vmem:[#allocation2 + $0x10] sm:$0xff] %v307_v37  ;;  %324 = vst [vmem:[#allocation2 + $0x18] sm:$0xff] %v308_v38  ;;  %v311_v51 = vadd.f32 %v545_v39, %v295_v35  ;;  %v312_v52 = vadd.f32 %v546_v40, %v296_v36  ;;  %v561_v3 = vunpack.c.l.bf16 %v569_v62  ;;  %v562_v4 = vunpack.c.h.bf16 %v569_v62 }
  0x3e   : > { %v299_v49 = vld [vmem:[#allocation2 + $0x50] sm:$0xff]  ;;  %v300_v50 = vld [vmem:[#allocation2 + $0x58] sm:$0xff]  ;;  %v301_v56 = vld [vmem:[#allocation2 + $0x60] sm:$0xff]  ;;  %325 = vst [vmem:[#allocation2 + $0x20] sm:$0xff] %v309_v44  ;;  %v313_v58 = vadd.f32 %v549_v46, %v297_v42  ;;  %v314_v59 = vadd.f32 %v550_v47, %v298_v43  ;;  %340 = sbr.rel (%p527_p12) target bundleno = 254 (0xfe), region = 73  ;;  %vm421_vm0 = vcmask (!%p527_p12), 7168  }
  0x3f   : > { %v302_v57 = vld [vmem:[#allocation2 + $0x68] sm:$0xff]  ;;  %326 = vst [vmem:[#allocation2 + $0x28] sm:$0xff] %v310_v45  ;;  %v303_v63 = vld [vmem:[#allocation2 + $0x70] sm:$0xff]  ;;  %v304_v0 = vld [vmem:[#allocation2 + $0x78] sm:$0xff]  ;;  %v315_v1 = vadd.f32 %v553_v53, %v299_v49  ;;  %v316_v2 = vadd.f32 %v554_v54, %v300_v50  ;;  %v317_v5 = vadd.f32 %v557_v60, %v301_v56 }
  0x40   : > { %327 = vst [vmem:[#allocation2 + $0x30] sm:$0xff] %v311_v51  ;;  %328 = vst [vmem:[#allocation2 + $0x38] sm:$0xff] %v312_v52  ;;  %v318_v6 = vadd.f32 %v558_v61, %v302_v57  ;;  %v319_v7 = vadd.f32 %v561_v3, %v303_v63  ;;  %v320_v8 = vadd.f32 %v562_v4, %v304_v0 }
  0x41   : > { %329 = vst [vmem:[#allocation2 + $0x40] sm:$0xff] %v313_v58  ;;  %330 = vst [vmem:[#allocation2 + $0x48] sm:$0xff] %v314_v59 }
  0x42   : > { %331 = vst [vmem:[#allocation2 + $0x50] sm:$0xff] %v315_v1  ;;  %332 = vst [vmem:[#allocation2 + $0x58] sm:$0xff] %v316_v2 }
  0x43   : > { %333 = vst [vmem:[#allocation2 + $0x60] sm:$0xff] %v317_v5  ;;  %334 = vst [vmem:[#allocation2 + $0x68] sm:$0xff] %v318_v6  ;;  %v341_v10 = vld [vmem:[#allocation2] sm:$0xff] (!%p527_p12)  ;;  %v342_v12 = vld [vmem:[#allocation2 + $0x8] sm:$0xff] (!%p527_p12) }
  0x44   : > { %335 = vst [vmem:[#allocation2 + $0x70] sm:$0xff] %v319_v7  ;;  %336 = vst [vmem:[#allocation2 + $0x78] sm:$0xff] %v320_v8  ;;  %v343_v9 = vld [vmem:[#allocation2 + $0x10] sm:$0xff] (!%p527_p12)  ;;  %357 = vadd.xlane.f32.xlu0 (!%p527_p12), %v341_v10  ;;  %v344_v11 = vld [vmem:[#allocation2 + $0x18] sm:$0xff] (!%p527_p12) }
  0x45   : > { %361 = vadd.xlane.f32.xlu1 %v343_v9  ;;  %v345_v14 = vld [vmem:[#allocation2 + $0x20] sm:$0xff] }
  0x46   : > { %v346_v13 = vld [vmem:[#allocation2 + $0x28] sm:$0xff] }
  0x47   : > { %v348_v15 = vld [vmem:[#allocation2 + $0x38] sm:$0xff]  ;;  %v347_v16 = vld [vmem:[#allocation2 + $0x30] sm:$0xff] }
  0x48   : > { %359 = vadd.xlane.f32.xlu0 %v342_v12  ;;  %v350_v17 = vld [vmem:[#allocation2 + $0x48] sm:$0xff]  ;;  %v349_v18 = vld [vmem:[#allocation2 + $0x40] sm:$0xff] }
  0x49   : > { %363 = vadd.xlane.f32.xlu1 %v344_v11  ;;  %v352_v19 = vld [vmem:[#allocation2 + $0x58] sm:$0xff]  ;;  %v351_v20 = vld [vmem:[#allocation2 + $0x50] sm:$0xff] }
  0x4a   : > { %v354_v21 = vld [vmem:[#allocation2 + $0x68] sm:$0xff]  ;;  %v353_v22 = vld [vmem:[#allocation2 + $0x60] sm:$0xff] }
  0x4b   : > { %v356_v23 = vld [vmem:[#allocation2 + $0x78] sm:$0xff]  ;;  %v355_v24 = vld [vmem:[#allocation2 + $0x70] sm:$0xff] }
  0x4c   : > { %365 = vadd.xlane.f32.xlu0 %v345_v14 }
  0x4d   : > { %367 = vadd.xlane.f32.xlu1 %v346_v13 }
  0x50   : > { %369 = vadd.xlane.f32.xlu0 %v347_v16 }
  0x51   : > { %371 = vadd.xlane.f32.xlu1 %v348_v15 }
  0x54   : > { %373 = vadd.xlane.f32.xlu0 %v349_v18 }
  0x55   : > { %375 = vadd.xlane.f32.xlu1 %v350_v17 }
  0x58   : > { %377 = vadd.xlane.f32.xlu0 %v351_v20 }
  0x59   : > { %379 = vadd.xlane.f32.xlu1 %v352_v19 }
  0x5c   : > { %381 = vadd.xlane.f32.xlu0 %v353_v22 }
  0x5d   : > { %383 = vadd.xlane.f32.xlu1 %v354_v21 }
  0x60   : > { %385 = vadd.xlane.f32.xlu0 %v355_v24 }
  0x61   : > { %387 = vadd.xlane.f32.xlu1 %v356_v23 }
  0xd1   : > { %v358_v26 = vpop.xlane.xlu0 %357 }
  0xd2   : > { %v362_v25 = vpop.xlane.xlu1 %361  ;;  %v389_v28 = vmax.f32 %v358_v26, 1.0 }
  0xd3   : > { %v391_v27 = vmax.f32 %v362_v25, 1.0 }
  0xd5   : > { %627 = vrsqrt.f32 %v391_v27  ;;  %v360_v30 = vpop.xlane.xlu0 %359 }
  0xd6   : > { %629 = vrsqrt.f32 %v389_v28  ;;  %v364_v29 = vpop.xlane.xlu1 %363  ;;  %v390_v32 = vmax.f32 %v360_v30, 1.0 }
  0xd7   : > { %v392_v31 = vmax.f32 %v364_v29, 1.0 }
  0xd9   : > { %631 = vrsqrt.f32 %v392_v31  ;;  %v366_v34 = vpop.xlane.xlu0 %365 }
  0xda   : > { %633 = vrsqrt.f32 %v390_v32  ;;  %v368_v33 = vpop.xlane.xlu1 %367  ;;  %v393_v36 = vmax.f32 %v366_v34, 1.0 }
  0xdb   : > { %v394_v35 = vmax.f32 %v368_v33, 1.0 }
  0xdd   : > { %635 = vrsqrt.f32 %v394_v35  ;;  %v370_v38 = vpop.xlane.xlu0 %369 }
  0xde   : > { %637 = vrsqrt.f32 %v393_v36  ;;  %v372_v37 = vpop.xlane.xlu1 %371  ;;  %v395_v41 = vmax.f32 %v370_v38, 1.0 }
  0xdf   : > { %v628_v39 = vpop.eup %627  ;;  %v396_v40 = vmax.f32 %v372_v37, 1.0 }
  0xe0   : > { %v630_v42 = vpop.eup %629  ;;  %424 = vst.msk [vmem:[%s811_s15 + $0x10] sm:$0xff] %vm421_vm0, %v628_v39 }
  0xe1   : > { %422 = vst.msk [vmem:[%s811_s15] sm:$0xff] %vm421_vm0, %v630_v42  ;;  %639 = vrsqrt.f32 %v396_v40  ;;  %v374_v44 = vpop.xlane.xlu0 %373 }
  0xe2   : > { %641 = vrsqrt.f32 %v395_v41  ;;  %v376_v43 = vpop.xlane.xlu1 %375  ;;  %v397_v47 = vmax.f32 %v374_v44, 1.0 }
  0xe3   : > { %v632_v45 = vpop.eup %631  ;;  %v398_v46 = vmax.f32 %v376_v43, 1.0 }
  0xe4   : > { %v634_v48 = vpop.eup %633  ;;  %425 = vst.msk [vmem:[%s811_s15 + $0x18] sm:$0xff] %vm421_vm0, %v632_v45 }
  0xe5   : > { %423 = vst.msk [vmem:[%s811_s15 + $0x8] sm:$0xff] %vm421_vm0, %v634_v48  ;;  %643 = vrsqrt.f32 %v398_v46  ;;  %v378_v50 = vpop.xlane.xlu0 %377 }
  0xe6   : > { %645 = vrsqrt.f32 %v397_v47  ;;  %v380_v49 = vpop.xlane.xlu1 %379  ;;  %v399_v53 = vmax.f32 %v378_v50, 1.0 }
  0xe7   : > { %v636_v51 = vpop.eup %635  ;;  %v400_v52 = vmax.f32 %v380_v49, 1.0 }
  0xe8   : > { %v638_v54 = vpop.eup %637  ;;  %427 = vst.msk [vmem:[%s811_s15 + $0x28] sm:$0xff] %vm421_vm0, %v636_v51 }
  0xe9   : > { %426 = vst.msk [vmem:[%s811_s15 + $0x20] sm:$0xff] %vm421_vm0, %v638_v54  ;;  %647 = vrsqrt.f32 %v400_v52  ;;  %v382_v56 = vpop.xlane.xlu0 %381 }
  0xea   : > { %649 = vrsqrt.f32 %v399_v53  ;;  %v384_v55 = vpop.xlane.xlu1 %383  ;;  %v401_v59 = vmax.f32 %v382_v56, 1.0 }
  0xeb   : > { %v640_v57 = vpop.eup %639  ;;  %v402_v58 = vmax.f32 %v384_v55, 1.0 }
  0xec   : > { %v642_v60 = vpop.eup %641  ;;  %429 = vst.msk [vmem:[%s811_s15 + $0x38] sm:$0xff] %vm421_vm0, %v640_v57 }
  0xed   : > { %428 = vst.msk [vmem:[%s811_s15 + $0x30] sm:$0xff] %vm421_vm0, %v642_v60  ;;  %651 = vrsqrt.f32 %v402_v58  ;;  %v386_v62 = vpop.xlane.xlu0 %385 }
  0xee   : > { %653 = vrsqrt.f32 %v401_v59  ;;  %v388_v61 = vpop.xlane.xlu1 %387  ;;  %v403_v1 = vmax.f32 %v386_v62, 1.0 }
  0xef   : > { %v644_v63 = vpop.eup %643  ;;  %v404_v0 = vmax.f32 %v388_v61, 1.0 }
  0xf0   : > { %v646_v2 = vpop.eup %645  ;;  %431 = vst.msk [vmem:[%s811_s15 + $0x48] sm:$0xff] %vm421_vm0, %v644_v63 }
  0xf1   : > { %430 = vst.msk [vmem:[%s811_s15 + $0x40] sm:$0xff] %vm421_vm0, %v646_v2  ;;  %655 = vrsqrt.f32 %v404_v0 }
  0xf2   : > { %657 = vrsqrt.f32 %v403_v1 }
  0xf3   : > { %v648_v3 = vpop.eup %647 }
  0xf4   : > { %v650_v4 = vpop.eup %649  ;;  %433 = vst.msk [vmem:[%s811_s15 + $0x58] sm:$0xff] %vm421_vm0, %v648_v3 }
  0xf5   : > { %432 = vst.msk [vmem:[%s811_s15 + $0x50] sm:$0xff] %vm421_vm0, %v650_v4 }
  0xf7   : > { %v652_v5 = vpop.eup %651 }
  0xf8   : > { %v654_v6 = vpop.eup %653  ;;  %435 = vst.msk [vmem:[%s811_s15 + $0x68] sm:$0xff] %vm421_vm0, %v652_v5 }
  0xf9   : > { %434 = vst.msk [vmem:[%s811_s15 + $0x60] sm:$0xff] %vm421_vm0, %v654_v6 }
  0xfb   : > { %v656_v7 = vpop.eup %655 }
  0xfc   : > { %v658_v8 = vpop.eup %657  ;;  %437 = vst.msk [vmem:[%s811_s15 + $0x78] sm:$0xff] %vm421_vm0, %v656_v7 }
  0xfd   : > { %436 = vst.msk [vmem:[%s811_s15 + $0x70] sm:$0xff] %vm421_vm0, %v658_v8 }
  0xfe PF: > { %s11_s12 = sadd.s32 1, %s713_s12   ;;  %s880_s6 = smov %s693_s7 }
  0xff   : > { %p8_p13 = scmp.ge.s32.totalorder %s11_s12, 6   ;;  %s881_s7 = smov %s777_s19 }
 0x100   : > { %s882_s8 = smov %s705_s10  ;;  %s883_s9 = smov %s709_s11 }
 0x101   : > { %s884_s10 = smov %s887_s13  ;;  %s885_s11 = smov %s891_s14 }
 0x102   :  { %10 = sbr.rel (!%p8_p13) target bundleno = 4 (0x4), region = 108 }

// kernel: rsgc_layer.5
= control target key start
LH: loop header
LB: loop body
LE: loop exit
PB: predicated region body
PF: predicated region fallthrough
CT: control target
= control target key end

     0   :  { %s1487_s18 = smov 0   ;;  %s1489_s19 = smov 0   ;;  %s1712_s0 = inlined_call_operand.vmem [shape: bf16[256,256], index: 0, kind: input, shape index: {}]   ;;  %s1713_s1 = inlined_call_operand.vmem [shape: bf16[256,128], index: 1, kind: input, shape index: {}]   ;;  %s1714_s2 = inlined_call_operand.vmem [shape: f32[256,1], index: 2, kind: input, shape index: {}, may-alias: {2,3}]   ;;  %s1715_s3 = inlined_call_operand.vmem [shape: f32[256,1], index: 3, kind: input, shape index: {}, may-alias: {2,3}]   ;;  %s1716_s4 = inlined_call_operand.vmem [shape: f32[256,128], index: 4, kind: input, shape index: {}, may-alias: {4,5}]   ;;  %s1717_s5 = inlined_call_operand.vmem [shape: f32[256,128], index: 5, kind: output, shape index: {}, may-alias: {4,5}]  }
   0x1   :  { %s1491_s20 = smov 0   ;;  %s1493_s21 = smov 0  }
   0x2   :  { %s1495_s22 = smov 0   ;;  %s1497_s23 = smov 0  }
   0x3   :  { %s1499_s24 = smov 0  }
   0x4 LB: > { %s27_s25 = sadd.s32 1, %s1444_s22  ;;  %s34_s26 = sadd.s32 1, %s1448_s23  ;;  %s1452_s24 = sphi %s1499_s24, %s15_s24   ;;  %s1448_s23 = sphi %s1497_s23, %s1723_s23   ;;  %s1444_s22 = sphi %s1495_s22, %s1722_s22   ;;  %s1440_s21 = sphi %s1493_s21, %s1721_s21   ;;  %s1436_s20 = sphi %s1491_s20, %s1720_s20   ;;  %s1432_s19 = sphi %s1489_s19, %s1719_s19   ;;  %s1428_s18 = sphi %s1487_s18, %s1718_s18  }
   0x5   : > { %p28_p0 = scmp.ge.s32.totalorder %s27_s25, 2  ;;  %p50_p1 = scmp.ne.s32.totalorder %s1432_s19, %s1428_s18 }
   0x6   : > { %p51_p2 = scmp.eq.s32.totalorder %s1452_s24, 0  ;;  %s43_s30 = sadd.s32 1, %s1432_s19 }
   0x7   : > { %s1725_s25 = smov (%p28_p0, %s27_s25), 0  ;;  %s1727_s26 = smov (!%p28_p0, %s34_s26), %s1448_s23 }
   0x8   : > { %p52_p3 = por %p51_p2, %p50_p1  ;;  %p36_p4 = scmp.ge.s32.totalorder %s1727_s26, 2 }
   0x9   : > { %s39_s27 = ssub.s32 %s1444_s22, %s1725_s25  ;;  %p1194_p6 = scmp.ge.s32.totalorder %s1452_s24, 4 }
   0xa   : > { %s1729_s26 = smov (%p36_p4, %s1727_s26), 0 }
   0xb   : > { %s38_s28 = ssub.s32 %s1448_s23, %s1729_s26  ;;  %212 = sbr.rel (%p1194_p6) target bundleno = 34 (0x22), region = 16 }
   0xc   : > { %s40_s29 = sor.u32 %s39_s27, %s38_s28 }
   0xd   : > { %p41_p5 = scmp.eq.s32.totalorder %s40_s29, 0 }
   0xf   : > { %s1538_s6 = scalar_select %p41_p5, %s1432_s19, %s43_s30  }
  0x12   : > { %215 = sbr.rel (!%p52_p3) target bundleno = 34 (0x22), region = 20  ;;  %s217_s7 = sand.u32 (%p52_p3), 1, %s1432_s19  }
  0x13   : > { %s1223_s8 = sshll.u32 (%p52_p3), %s1448_s23, 5  ;;  %s1195_s9 = sshll.u32 (%p52_p3), %s217_s7, 6 }
  0x14   : > { %s222_s10 = sadd.s32 (%p52_p3), %s1444_s22, %s1223_s8  ;;  %s219_s15 = scalar_lea.vmem (%p52_p3), [#allocation3], %s1195_s9 }
  0x15   : > { %s1198_s11 = sshll.u32 (%p52_p3), %s222_s10, 2 }
  0x16   : > { %s1547_s14 = scalar_lea.vmem (%p52_p3), %s1712_s0, %s1198_s11 }
  0x17   : > { %v240_v0 = vld [vmem:[%s1547_s14] sm:$0xf] (%p52_p3)  ;;  %v242_v1 = vld [vmem:[%s1547_s14 + $0x8] sm:$0xf] (%p52_p3)  ;;  %v244_v2 = vld [vmem:[%s1547_s14 + $0x10] sm:$0xf] (%p52_p3) }
  0x18   : > { %241 = vst [vmem:[%s219_s15] sm:$0xf] (%p52_p3), %v240_v0  ;;  %243 = vst [vmem:[%s219_s15 + $0x4] sm:$0xf] (%p52_p3), %v242_v1  ;;  %v246_v3 = vld [vmem:[%s1547_s14 + $0x18] sm:$0xf] (%p52_p3) }
  0x19   : > { %245 = vst [vmem:[%s219_s15 + $0x8] sm:$0xf] %v244_v2  ;;  %v248_v4 = vld [vmem:[%s1547_s14 + $0x20] sm:$0xf]  ;;  %v250_v5 = vld [vmem:[%s1547_s14 + $0x28] sm:$0xf] }
  0x1a   : > { %247 = vst [vmem:[%s219_s15 + $0xc] sm:$0xf] %v246_v3  ;;  %249 = vst [vmem:[%s219_s15 + $0x10] sm:$0xf] %v248_v4  ;;  %v252_v6 = vld [vmem:[%s1547_s14 + $0x30] sm:$0xf] }
  0x1b   : > { %251 = vst [vmem:[%s219_s15 + $0x14] sm:$0xf] %v250_v5  ;;  %v254_v7 = vld [vmem:[%s1547_s14 + $0x38] sm:$0xf]  ;;  %v256_v8 = vld [vmem:[%s1547_s14 + $0x40] sm:$0xf] }
  0x1c   : > { %253 = vst [vmem:[%s219_s15 + $0x18] sm:$0xf] %v252_v6  ;;  %255 = vst [vmem:[%s219_s15 + $0x1c] sm:$0xf] %v254_v7  ;;  %v258_v9 = vld [vmem:[%s1547_s14 + $0x48] sm:$0xf] }
  0x1d   : > { %257 = vst [vmem:[%s219_s15 + $0x20] sm:$0xf] %v256_v8  ;;  %v260_v10 = vld [vmem:[%s1547_s14 + $0x50] sm:$0xf]  ;;  %v262_v11 = vld [vmem:[%s1547_s14 + $0x58] sm:$0xf] }
  0x1e   : > { %259 = vst [vmem:[%s219_s15 + $0x24] sm:$0xf] %v258_v9  ;;  %261 = vst [vmem:[%s219_s15 + $0x28] sm:$0xf] %v260_v10  ;;  %v264_v12 = vld [vmem:[%s1547_s14 + $0x60] sm:$0xf] }
  0x1f   : > { %263 = vst [vmem:[%s219_s15 + $0x2c] sm:$0xf] %v262_v11  ;;  %v266_v13 = vld [vmem:[%s1547_s14 + $0x68] sm:$0xf]  ;;  %v268_v14 = vld [vmem:[%s1547_s14 + $0x70] sm:$0xf] }
  0x20   : > { %265 = vst [vmem:[%s219_s15 + $0x30] sm:$0xf] %v264_v12  ;;  %267 = vst [vmem:[%s219_s15 + $0x34] sm:$0xf] %v266_v13  ;;  %v270_v15 = vld [vmem:[%s1547_s14 + $0x78] sm:$0xf] }
  0x21   : > { %269 = vst [vmem:[%s219_s15 + $0x38] sm:$0xf] %v268_v14  ;;  %271 = vst [vmem:[%s219_s15 + $0x3c] sm:$0xf] %v270_v15 }
  0x22 PF: > { %p1199_p7 = scmp.ge.s32.totalorder %s1452_s24, 1  ;;  %p367_p8 = scmp.lt.s32.totalorder %s1452_s24, 5 }
  0x24   : > { %p368_p9 = pnand %p1199_p7, %p367_p8 }
  0x25   : > { %s374_s16 = sand.u32 (!%p368_p9), 1, %s1428_s18   ;;  %s1201_s17 = sshll.u32 (!%p368_p9), %s1436_s20, 4 }
  0x26   : > { %371 = sbr.rel (%p368_p9) target bundleno = 573 (0x23d), region = 77  ;;  %s1200_s27 = sshll.u32 (!%p368_p9), %s374_s16, 6 }
  0x27   : > { %p432_p10 = scmp.lt.s32.totalorder (!%p368_p9), %s1201_s17, 31  ;;  %s1205_s28 = sshll.u32 (!%p368_p9), %s1440_s21, 4 }
  0x28   : > { %p447_p11 = scmp.lt.s32.totalorder (!%p368_p9), %s1205_s28, 31  ;;  %s1595_s10 = scalar_lea.vmem (!%p368_p9), [#allocation3], %s1200_s27 }
  0x29   : > { %p1211_p12 = scmp.ne.s32.totalorder (!%p368_p9), %s1436_s20, 0 }
  0x2d   : > { %s1731_s17 = smov (!%p432_p10, %s1201_s17), 31  ;;  %s1733_s28 = smov (!%p447_p11, %s1205_s28), 31 }
  0x2e   : > { %s1202_s29 = sshll.u32 %s1731_s17, 2  ;;  %s1204_s30 = sshll.u32 %s1731_s17, 3  ;;  %v1454_v16 = vmov (!%p1211_p12), 0.0  }
  0x2f   : > { %s1573_s9 = scalar_lea.vmem %s1713_s1, %s1202_s29  ;;  %s1578_s12 = scalar_lea.vmem %s1714_s2, %s1204_s30  ;;  %475 = vst [vmem:[#allocation2] sm:$0xff] (!%p1211_p12), %v1454_v16  ;;  %476 = vst [vmem:[#allocation2 + $0x8] sm:$0xff] (!%p1211_p12), %v1454_v16 }
  0x30   : > { %s1206_s18 = sshll.u32 %s1733_s28, 3  ;;  %474 = sbr.rel (%p1211_p12) target bundleno = 55 (0x37), region = 85  ;;  %477 = vst [vmem:[#allocation2 + $0x10] sm:$0xff] (!%p1211_p12), %v1454_v16  ;;  %478 = vst [vmem:[#allocation2 + $0x18] sm:$0xff] (!%p1211_p12), %v1454_v16 }
  0x31   : > { %s1583_s21 = scalar_lea.vmem %s1715_s3, %s1206_s18  ;;  %s1588_s17 = scalar_lea.vmem %s1716_s4, %s1206_s18  ;;  %479 = vst [vmem:[#allocation2 + $0x20] sm:$0xff] (!%p1211_p12), %v1454_v16  ;;  %480 = vst [vmem:[#allocation2 + $0x28] sm:$0xff] (!%p1211_p12), %v1454_v16 }
  0x32   : > { %s1593_s8 = scalar_lea.vmem %s1717_s5, %s1206_s18  ;;  %481 = vst [vmem:[#allocation2 + $0x30] sm:$0xff] (!%p1211_p12), %v1454_v16  ;;  %482 = vst [vmem:[#allocation2 + $0x38] sm:$0xff] (!%p1211_p12), %v1454_v16 }
  0x33   : > { %483 = vst [vmem:[#allocation2 + $0x40] sm:$0xff] (!%p1211_p12), %v1454_v16  ;;  %484 = vst [vmem:[#allocation2 + $0x48] sm:$0xff] (!%p1211_p12), %v1454_v16 }
  0x34   : > { %485 = vst [vmem:[#allocation2 + $0x50] sm:$0xff] (!%p1211_p12), %v1454_v16  ;;  %486 = vst [vmem:[#allocation2 + $0x58] sm:$0xff] (!%p1211_p12), %v1454_v16 }
  0x35   : > { %487 = vst [vmem:[#allocation2 + $0x60] sm:$0xff] (!%p1211_p12), %v1454_v16  ;;  %488 = vst [vmem:[#allocation2 + $0x68] sm:$0xff] (!%p1211_p12), %v1454_v16 }
  0x36   : > { %489 = vst [vmem:[#allocation2 + $0x70] sm:$0xff] (!%p1211_p12), %v1454_v16  ;;  %490 = vst [vmem:[#allocation2 + $0x78] sm:$0xff] (!%p1211_p12), %v1454_v16 }
  0x37 PF: > { %v525_v17 = vld [vmem:[%s1578_s12 + $0x10] sm:$0xff]  ;;  %v523_v18 = vld [vmem:[%s1578_s12] sm:$0xff]  ;;  %v1455_v19 = vmov 0   ;;  %v526_v20 = vld [vmem:[%s1578_s12 + $0x18] sm:$0xff]  ;;  %p1220_p13 = scmp.ne.s32.totalorder %s1436_s20, 1 }
  0x38   : > { %1387 = vset.pattern.permute.xlu1 %v1455_v19  ;;  %1386 = vset.pattern.permute.xlu0 %v1455_v19  ;;  %v524_v21 = vld [vmem:[%s1578_s12 + $0x8] sm:$0xff]  ;;  %v527_v23 = vld [vmem:[%s1578_s12 + $0x20] sm:$0xff]  ;;  %v530_v24 = vld [vmem:[%s1578_s12 + $0x38] sm:$0xff] }
  0x39   : > { %551 = vperm.xlu1 %1387, %v525_v17   ;;  %541 = vperm.xlu0 %1386, %v523_v18   ;;  %v528_v22 = vld [vmem:[%s1578_s12 + $0x28] sm:$0xff]  ;;  %v529_v25 = vld [vmem:[%s1578_s12 + $0x30] sm:$0xff]  ;;  %v531_v27 = vld [vmem:[%s1578_s12 + $0x40] sm:$0xff] }
  0x3a   : > { %v532_v26 = vld [vmem:[%s1578_s12 + $0x48] sm:$0xff]  ;;  %v534_v28 = vld [vmem:[%s1578_s12 + $0x58] sm:$0xff]  ;;  %v533_v29 = vld [vmem:[%s1578_s12 + $0x50] sm:$0xff] }
  0x3b   : > { %v536_v30 = vld [vmem:[%s1578_s12 + $0x68] sm:$0xff]  ;;  %v535_v31 = vld [vmem:[%s1578_s12 + $0x60] sm:$0xff]  ;;  %v538_v32 = vld [vmem:[%s1578_s12 + $0x78] sm:$0xff] }
  0x3c   : > { %v537_v33 = vld [vmem:[%s1578_s12 + $0x70] sm:$0xff]  ;;  %v1388_v34 = vld [vmem:[%s1595_s10] sm:$0xff]   ;;  %v1256_v36 = vld [vmem:[%s1573_s9 + $0x8] sm:$0xff]  }
  0x3d   : > { %556 = vperm.xlu1 %1387, %v526_v20   ;;  %546 = vperm.xlu0 %1386, %v524_v21   ;;  %v1389_v35 = vld [vmem:[%s1595_s10 + $0x20] sm:$0xff]   ;;  %v1230_v40 = vunpack.c.l.bf16 %v1256_v36  ;;  %v1231_v42 = vunpack.c.h.bf16 %v1256_v36  ;;  %v1257_v44 = vld [vmem:[%s1573_s9 + $0x10] sm:$0xff]   ;;  %v1258_v53 = vld [vmem:[%s1573_s9 + $0x18] sm:$0xff]  }
  0x3e   : > { %1295 = vmatprep.mubr.bf16.mxu0 %v1388_v34  ;;  %1303 = vmatprep.mubr.bf16.mxu1 %v1389_v35  ;;  %v1225_v37 = vld [vmem:[%s1573_s9] sm:$0xff]   ;;  %v1235_v47 = vunpack.c.h.bf16 %v1257_v44  ;;  %v1234_v48 = vunpack.c.l.bf16 %v1257_v44  ;;  %v1239_v57 = vunpack.c.h.bf16 %v1258_v53  ;;  %v1238_v61 = vunpack.c.l.bf16 %v1258_v53  ;;  %v1260_v6 = vld [vmem:[%s1573_s9 + $0x28] sm:$0xff]   ;;  %v1261_v14 = vld [vmem:[%s1573_s9 + $0x30] sm:$0xff]  }
  0x3f   : > { %v1226_v41 = vunpack.c.l.bf16 %v1225_v37  ;;  %v1227_v43 = vunpack.c.h.bf16 %v1225_v37  ;;  %v1259_v62 = vld [vmem:[%s1573_s9 + $0x20] sm:$0xff]   ;;  %v1247_v9 = vunpack.c.h.bf16 %v1260_v6  ;;  %v1246_v13 = vunpack.c.l.bf16 %v1260_v6  ;;  %v1390_v36 = vld [vmem:[%s1595_s10 + $0x8] sm:$0xff]  }
  0x40   : > { %v1243_v1 = vunpack.c.h.bf16 %v1259_v62  ;;  %v1242_v5 = vunpack.c.l.bf16 %v1259_v62  ;;  %v1251_v17 = vunpack.c.h.bf16 %v1261_v14  ;;  %v1250_v21 = vunpack.c.l.bf16 %v1261_v14  ;;  %v1391_v37 = vld [vmem:[%s1595_s10 + $0x28] sm:$0xff]   ;;  %v643_v44 = vld [vmem:[#allocation2] sm:$0xff] }
  0x41   : > { %566 = vperm.xlu1 %1387, %v528_v22   ;;  %561 = vperm.xlu0 %1386, %v527_v23   ;;  %v1262_v22 = vld [vmem:[%s1573_s9 + $0x38] sm:$0xff]   ;;  %v648_v14 = vld [vmem:[#allocation2 + $0x28] sm:$0xff] }
  0x45   : > { %576 = vperm.xlu1 %1387, %v530_v24   ;;  %571 = vperm.xlu0 %1386, %v529_v25   ;;  %v1255_v25 = vunpack.c.h.bf16 %v1262_v22 }
  0x49   : > { %586 = vperm.xlu1 %1387, %v532_v26   ;;  %581 = vperm.xlu0 %1386, %v531_v27  }
  0x4d   : > { %596 = vperm.xlu1 %1387, %v534_v28   ;;  %591 = vperm.xlu0 %1386, %v533_v29   ;;  %v1254_v29 = vunpack.c.l.bf16 %v1262_v22 }
  0x51   : > { %606 = vperm.xlu1 %1387, %v536_v30   ;;  %601 = vperm.xlu0 %1386, %v535_v31  }
  0x55   : > { %616 = vperm.xlu1 %1387, %v538_v32   ;;  %611 = vperm.xlu0 %1386, %v537_v33  }
  0xb8   : > { %v552_v38 = vpop.permute.xlu1 %551  ;;  %v542_v39 = vpop.permute.xlu0 %541 }
  0xb9   : > { %v621_v49 = vmul.f32 %v1230_v40, %v552_v38  ;;  %v619_v50 = vmul.f32 %v1226_v41, %v542_v39  ;;  %v1392_v38 = vld [vmem:[%s1595_s10 + $0x10] sm:$0xff]   ;;  %v1394_v40 = vld [vmem:[%s1595_s10 + $0x18] sm:$0xff]  }
  0xba   : > { %v1393_v39 = vld [vmem:[%s1595_s10 + $0x30] sm:$0xff]   ;;  %v1395_v41 = vld [vmem:[%s1595_s10 + $0x38] sm:$0xff]  }
  0xbc   : > { %v557_v45 = vpop.permute.xlu1 %556  ;;  %v547_v46 = vpop.permute.xlu0 %546 }
  0xbd   : > { %v622_v51 = vmul.f32 %v1231_v42, %v557_v45  ;;  %v620_v52 = vmul.f32 %v1227_v43, %v547_v46  ;;  %v645_v42 = vld [vmem:[#allocation2 + $0x10] sm:$0xff]  ;;  %v651_v45 = vld [vmem:[#allocation2 + $0x40] sm:$0xff] }
  0xbe   : > { %v653_v43 = vld [vmem:[#allocation2 + $0x50] sm:$0xff] }
  0xbf   : > { %v635_v54 = vpack.c.bf16 %v620_v52, %v619_v50  ;;  %v636_v58 = vpack.c.bf16 %v622_v51, %v621_v49  ;;  %v654_v49 = vld [vmem:[#allocation2 + $0x58] sm:$0xff] }
  0xc0   : > { %v567_v55 = vpop.permute.xlu1 %566  ;;  %v562_v56 = vpop.permute.xlu0 %561 }
  0xc1   : > { %v624_v59 = vmul.f32 %v1235_v47, %v567_v55  ;;  %v623_v60 = vmul.f32 %v1234_v48, %v562_v56  ;;  %1279 = vmatprep.subr.bf16.mxu0 %v635_v54  ;;  %1311 = vmatprep.subr.bf16.mxu1 %v635_v54  ;;  %v646_v48 = vld [vmem:[#allocation2 + $0x18] sm:$0xff]  ;;  %v652_v55 = vld [vmem:[#allocation2 + $0x48] sm:$0xff] }
  0xc2   : > { %1280 = vmatpush3.bf16.msra.mxu0 %v635_v54  ;;  %1319 = vmatpush3.bf16.msra.mxu1 %v635_v54  ;;  %v644_v54 = vld [vmem:[#allocation2 + $0x8] sm:$0xff] }
  0xc3   : > { %1281 = vmatprep.subr.bf16.mxu0 %v636_v58  ;;  %1312 = vmatprep.subr.bf16.mxu1 %v636_v58  ;;  %v637_v2 = vpack.c.bf16 %v624_v59, %v623_v60 }
  0xc4   : > { %v577_v63 = vpop.permute.xlu1 %576  ;;  %v572_v0 = vpop.permute.xlu0 %571 }
  0xc5   : > { %v626_v3 = vmul.f32 %v1239_v57, %v577_v63  ;;  %v625_v4 = vmul.f32 %v1238_v61, %v572_v0 }
  0xc6   : > { %1282 = vmatpush3.bf16.msra.mxu0 %v636_v58  ;;  %1320 = vmatpush3.bf16.msra.mxu1 %v636_v58 }
  0xc7   : > { %1283 = vmatprep.subr.bf16.mxu0 %v637_v2  ;;  %1313 = vmatprep.subr.bf16.mxu1 %v637_v2  ;;  %v638_v10 = vpack.c.bf16 %v626_v3, %v625_v4  ;;  %v657_v3 = vld [vmem:[#allocation2 + $0x70] sm:$0xff]  ;;  %v647_v4 = vld [vmem:[#allocation2 + $0x20] sm:$0xff] }
  0xc8   : > { %v587_v7 = vpop.permute.xlu1 %586  ;;  %v582_v8 = vpop.permute.xlu0 %581 }
  0xc9   : > { %v628_v11 = vmul.f32 %v1243_v1, %v587_v7  ;;  %v627_v12 = vmul.f32 %v1242_v5, %v582_v8  ;;  %v655_v5 = vld [vmem:[#allocation2 + $0x60] sm:$0xff]  ;;  %v650_v8 = vld [vmem:[#allocation2 + $0x38] sm:$0xff] }
  0xca   : > { %1284 = vmatpush3.bf16.msra.mxu0 %v637_v2  ;;  %1321 = vmatpush3.bf16.msra.mxu1 %v637_v2  ;;  %v649_v2 = vld [vmem:[#allocation2 + $0x30] sm:$0xff] }
  0xcb   : > { %1285 = vmatprep.subr.bf16.mxu0 %v638_v10  ;;  %1314 = vmatprep.subr.bf16.mxu1 %v638_v10  ;;  %v639_v18 = vpack.c.bf16 %v628_v11, %v627_v12 }
  0xcc   : > { %v597_v15 = vpop.permute.xlu1 %596  ;;  %v592_v16 = vpop.permute.xlu0 %591 }
  0xcd   : > { %v630_v19 = vmul.f32 %v1247_v9, %v597_v15  ;;  %v629_v20 = vmul.f32 %v1246_v13, %v592_v16  ;;  %v658_v9 = vld [vmem:[#allocation2 + $0x78] sm:$0xff]  ;;  %v656_v15 = vld [vmem:[#allocation2 + $0x68] sm:$0xff] }
  0xce   : > { %1286 = vmatpush3.bf16.msra.mxu0 %v638_v10  ;;  %1322 = vmatpush3.bf16.msra.mxu1 %v638_v10 }
  0xcf   : > { %1287 = vmatprep.subr.bf16.mxu0 %v639_v18  ;;  %1315 = vmatprep.subr.bf16.mxu1 %v639_v18  ;;  %v640_v26 = vpack.c.bf16 %v630_v19, %v629_v20 }
  0xd0   : > { %v607_v23 = vpop.permute.xlu1 %606  ;;  %v602_v24 = vpop.permute.xlu0 %601 }
  0xd1   : > { %v632_v27 = vmul.f32 %v1251_v17, %v607_v23  ;;  %v631_v28 = vmul.f32 %v1250_v21, %v602_v24 }
  0xd2   : > { %1288 = vmatpush3.bf16.msra.mxu0 %v639_v18  ;;  %1323 = vmatpush3.bf16.msra.mxu1 %v639_v18 }
  0xd3   : > { %1289 = vmatprep.subr.bf16.mxu0 %v640_v26  ;;  %1316 = vmatprep.subr.bf16.mxu1 %v640_v26  ;;  %v641_v32 = vpack.c.bf16 %v632_v27, %v631_v28  ;;  %v872_v27 = vld [vmem:[%s1583_s21] sm:$0xff] (!%p1220_p13)  ;;  %v1456_v28 = vmov (!%p1220_p13), 0  }
  0xd4   : > { %v617_v30 = vpop.permute.xlu1 %616  ;;  %v612_v31 = vpop.permute.xlu0 %611  ;;  %1397 = vset.pattern.permute.xlu1 (!%p1220_p13), %v1456_v28  ;;  %1396 = vset.pattern.permute.xlu0 (!%p1220_p13), %v1456_v28 }
  0xd5   : > { %v634_v33 = vmul.f32 %v1255_v25, %v617_v30  ;;  %v633_v34 = vmul.f32 %v1254_v29, %v612_v31  ;;  %890 = vperm.xlu0 (!%p1220_p13), %1396, %v872_v27   ;;  %v875_v29 = vld [vmem:[%s1583_s21 + $0x18] sm:$0xff] (!%p1220_p13)  ;;  %v873_v30 = vld [vmem:[%s1583_s21 + $0x8] sm:$0xff] (!%p1220_p13) }
  0xd6   : > { %1290 = vmatpush3.bf16.msra.mxu0 %v640_v26  ;;  %1324 = vmatpush3.bf16.msra.mxu1 %v640_v26  ;;  %v874_v26 = vld [vmem:[%s1583_s21 + $0x10] sm:$0xff] (!%p1220_p13)  ;;  %v877_v31 = vld [vmem:[%s1583_s21 + $0x28] sm:$0xff] (!%p1220_p13) }
  0xd7   : > { %1291 = vmatprep.subr.bf16.mxu0 %v641_v32  ;;  %1317 = vmatprep.subr.bf16.mxu1 %v641_v32  ;;  %v642_v35 = vpack.c.bf16 %v634_v33, %v633_v34  ;;  %v879_v33 = vld [vmem:[%s1583_s21 + $0x38] sm:$0xff] (!%p1220_p13)  ;;  %v878_v34 = vld [vmem:[%s1583_s21 + $0x30] sm:$0xff] (!%p1220_p13) }
  0xd8   : > { %900 = vperm.xlu1 (!%p1220_p13), %1397, %v874_v26  }
  0xd9   : > { %895 = vperm.xlu0 (!%p1220_p13), %1396, %v873_v30  }
  0xda   : > { %1292 = vmatpush3.bf16.msra.mxu0 %v641_v32  ;;  %1325 = vmatpush3.bf16.msra.mxu1 %v641_v32  ;;  %v876_v32 = vld [vmem:[%s1583_s21 + $0x20] sm:$0xff] (!%p1220_p13) }
  0xdb   : > { %1293 = vmatprep.subr.bf16.mxu0 %v642_v35  ;;  %1318 = vmatprep.subr.bf16.mxu1 %v642_v35 }
  0xdc   : > { %905 = vperm.xlu1 (!%p1220_p13), %1397, %v875_v29  }
  0xdd   : > { %910 = vperm.xlu0 (!%p1220_p13), %1396, %v876_v32  }
  0xde   : > { %1294 = vmatpush3.bf16.msra.mxu0 %v642_v35  ;;  %1326 = vmatpush3.bf16.msra.mxu1 %v642_v35  ;;  %v881_v35 = vld [vmem:[%s1583_s21 + $0x48] sm:$0xff] (!%p1220_p13) }
  0xe0   : > { %915 = vperm.xlu1 (!%p1220_p13), %1397, %v877_v31  }
  0xe1   : > { %1296 = vmatmul.mubr.bf16.vlgmr.msra.gmra.mrb[0].mxu0 %v1390_v36  ;;  %1304 = vmatmul.mubr.bf16.vlgmr.msra.gmra.mrb[0].mxu1 %v1391_v37  ;;  %v880_v36 = vld [vmem:[%s1583_s21 + $0x40] sm:$0xff] (!%p1220_p13)  ;;  %v883_v37 = vld [vmem:[%s1583_s21 + $0x58] sm:$0xff] (!%p1220_p13) }
  0xe2   : > { %1299 = vmatprep.mubr.bf16.mxu0 %v1392_v38  ;;  %1307 = vmatprep.mubr.bf16.mxu1 %v1393_v39  ;;  %v882_v38 = vld [vmem:[%s1583_s21 + $0x50] sm:$0xff] (!%p1220_p13)  ;;  %v885_v39 = vld [vmem:[%s1583_s21 + $0x68] sm:$0xff] (!%p1220_p13) }
  0xe3   : > { %920 = vperm.xlu0 (!%p1220_p13), %1396, %v878_v34  }
  0xe4   : > { %925 = vperm.xlu1 (!%p1220_p13), %1397, %v879_v33  }
  0xe7   : > { %930 = vperm.xlu0 (!%p1220_p13), %1396, %v880_v36  }
  0xe8   : > { %935 = vperm.xlu1 (!%p1220_p13), %1397, %v881_v35  }
  0xe9   : > { %1300 = vmatmul.mubr.bf16.gmra.mrb[4].mxu0 %v1394_v40  ;;  %1308 = vmatmul.mubr.bf16.gmra.mrb[4].mxu1 %v1395_v41  ;;  %v884_v40 = vld [vmem:[%s1583_s21 + $0x60] sm:$0xff] (!%p1220_p13)  ;;  %v887_v41 = vld [vmem:[%s1583_s21 + $0x78] sm:$0xff] (!%p1220_p13) }
  0xeb   : > { %940 = vperm.xlu0 (!%p1220_p13), %1396, %v882_v38  }
  0xec   : > { %945 = vperm.xlu1 (!%p1220_p13), %1397, %v883_v37  }
  0xef   : > { %950 = vperm.xlu0 (!%p1220_p13), %1396, %v884_v40  }
  0xf0   : > { %955 = vperm.xlu1 (!%p1220_p13), %1397, %v885_v39  }
  0xf4   : > { %965 = vperm.xlu1 (!%p1220_p13), %1397, %v887_v41  }
 0x1b4   : > { %v1297_v46 = vpop.f32.mrb[0].mxu0  ;;  %v1305_v47 = vpop.f32.mrb[0].mxu1 }
 0x1b5   : > { %v822_v50 = vadd.f32 %v1297_v46, %v645_v42  ;;  %v830_v51 = vadd.f32 %v1305_v47, %v653_v43  ;;  %v757_v52 = vpop.f32.mrb[1].mxu0  ;;  %v789_v53 = vpop.f32.mrb[1].mxu1  ;;  %v886_v42 = vld [vmem:[%s1583_s21 + $0x70] sm:$0xff] (!%p1220_p13)  ;;  %v984_v47 = vld [vmem:[%s1588_s17] sm:$0xff] (!%p1220_p13) }
 0x1b6   : > { %v820_v56 = vadd.f32 %v757_v52, %v643_v44  ;;  %v828_v57 = vadd.f32 %v789_v53, %v651_v45  ;;  %v1298_v58 = vpop.f32.mrb[2].mxu0  ;;  %v1306_v59 = vpop.f32.mrb[2].mxu1  ;;  %960 = vperm.xlu0 (!%p1220_p13), %1396, %v886_v42   ;;  %v986_v45 = vld [vmem:[%s1588_s17 + $0x10] sm:$0xff] (!%p1220_p13)  ;;  %v987_v53 = vld [vmem:[%s1588_s17 + $0x18] sm:$0xff] (!%p1220_p13) }
 0x1b7   : > { %838 = vst [vmem:[#allocation2 + $0x10] sm:$0xff] %v822_v50  ;;  %846 = vst [vmem:[#allocation2 + $0x50] sm:$0xff] %v830_v51  ;;  %v823_v60 = vadd.f32 %v1298_v58, %v646_v48  ;;  %v831_v61 = vadd.f32 %v1306_v59, %v654_v49  ;;  %v760_v62 = vpop.f32.mrb[3].mxu0  ;;  %v792_v63 = vpop.f32.mrb[3].mxu1  ;;  %v990_v58 = vld [vmem:[%s1588_s17 + $0x30] sm:$0xff] (!%p1220_p13)  ;;  %v993_v59 = vld [vmem:[%s1588_s17 + $0x48] sm:$0xff] (!%p1220_p13) }
 0x1b8   : > { %836 = vst [vmem:[#allocation2] sm:$0xff] %v820_v56  ;;  %844 = vst [vmem:[#allocation2 + $0x40] sm:$0xff] %v828_v57  ;;  %v821_v0 = vadd.f32 %v760_v62, %v644_v54  ;;  %v829_v1 = vadd.f32 %v792_v63, %v652_v55  ;;  %v901_v46 = vpop.permute.xlu1 (!%p1220_p13), %900  ;;  %v891_v48 = vpop.permute.xlu0 (!%p1220_p13), %890  ;;  %v985_v54 = vld [vmem:[%s1588_s17 + $0x8] sm:$0xff] (!%p1220_p13)  ;;  %v988_v56 = vld [vmem:[%s1588_s17 + $0x20] sm:$0xff] (!%p1220_p13) }
 0x1b9   : > { %839 = vst [vmem:[#allocation2 + $0x18] sm:$0xff] %v823_v60  ;;  %847 = vst [vmem:[#allocation2 + $0x58] sm:$0xff] %v831_v61  ;;  %v989_v55 = vld [vmem:[%s1588_s17 + $0x28] sm:$0xff] (!%p1220_p13)  ;;  %v991_v57 = vld [vmem:[%s1588_s17 + $0x38] sm:$0xff] (!%p1220_p13) }
 0x1ba   : > { %837 = vst [vmem:[#allocation2 + $0x8] sm:$0xff] %v821_v0  ;;  %845 = vst [vmem:[#allocation2 + $0x48] sm:$0xff] %v829_v1  ;;  %v992_v60 = vld [vmem:[%s1588_s17 + $0x40] sm:$0xff] (!%p1220_p13)  ;;  %v995_v63 = vld [vmem:[%s1588_s17 + $0x58] sm:$0xff] (!%p1220_p13) }
 0x1bb   : > { %v994_v0 = vld [vmem:[%s1588_s17 + $0x50] sm:$0xff] (!%p1220_p13)  ;;  %v1660_v1 = vld [vmem:[%s1588_s17 + $0x68] sm:$0xff] (!%p1220_p13) }
 0x1bc   : > { %v1301_v6 = vpop.f32.mrb[4].mxu0  ;;  %v1309_v7 = vpop.f32.mrb[4].mxu1  ;;  %855 = sbr.rel (%p1220_p13) target bundleno = 573 (0x23d), region = 89 }
 0x1bd   : > { %v826_v10 = vadd.f32 %v1301_v6, %v649_v2  ;;  %v834_v11 = vadd.f32 %v1309_v7, %v657_v3  ;;  %v773_v12 = vpop.f32.mrb[5].mxu0  ;;  %v805_v13 = vpop.f32.mrb[5].mxu1  ;;  %v1669_v6 = vld [vmem:[%s1588_s17 + $0x70] sm:$0xff] (!%p1220_p13) }
 0x1be   : > { %v824_v16 = vadd.f32 %v773_v12, %v647_v4  ;;  %v832_v17 = vadd.f32 %v805_v13, %v655_v5  ;;  %v1302_v18 = vpop.f32.mrb[6].mxu0  ;;  %v1310_v19 = vpop.f32.mrb[6].mxu1  ;;  %v858_v43 = vld [vmem:[#allocation2 + $0x10] sm:$0xff] (!%p1220_p13)  ;;  %v1663_v4 = vld [vmem:[%s1588_s17 + $0x60] sm:$0xff] (!%p1220_p13)  ;;  %v1666_v5 = vld [vmem:[%s1588_s17 + $0x78] sm:$0xff] (!%p1220_p13) }
 0x1bf   : > { %842 = vst [vmem:[#allocation2 + $0x30] sm:$0xff] %v826_v10  ;;  %850 = vst [vmem:[#allocation2 + $0x70] sm:$0xff] %v834_v11  ;;  %v827_v20 = vadd.f32 %v1302_v18, %v650_v8  ;;  %v835_v21 = vadd.f32 %v1310_v19, %v658_v9  ;;  %v776_v22 = vpop.f32.mrb[7].mxu0  ;;  %v808_v23 = vpop.f32.mrb[7].mxu1  ;;  %v856_v44 = vld [vmem:[#allocation2] sm:$0xff] (!%p1220_p13)  ;;  %v970_v49 = vmul.f32 (!%p1220_p13), %v901_v46, %v858_v43  ;;  %v866_v42 = vld [vmem:[#allocation2 + $0x50] sm:$0xff] (!%p1220_p13) }
 0x1c0   : > { %840 = vst [vmem:[#allocation2 + $0x20] sm:$0xff] %v824_v16  ;;  %848 = vst [vmem:[#allocation2 + $0x60] sm:$0xff] %v832_v17  ;;  %v825_v24 = vadd.f32 %v776_v22, %v648_v14  ;;  %v833_v25 = vadd.f32 %v808_v23, %v656_v15  ;;  %v968_v50 = vmul.f32 (!%p1220_p13), %v891_v48, %v856_v44  ;;  %v859_v51 = vld [vmem:[#allocation2 + $0x18] sm:$0xff] (!%p1220_p13)  ;;  %v906_v2 = vpop.permute.xlu1 (!%p1220_p13), %905  ;;  %v896_v3 = vpop.permute.xlu0 (!%p1220_p13), %895  ;;  %v864_v32 = vld [vmem:[#allocation2 + $0x40] sm:$0xff] (!%p1220_p13) }
 0x1c1   : > { %843 = vst [vmem:[#allocation2 + $0x38] sm:$0xff] %v827_v20  ;;  %851 = vst [vmem:[#allocation2 + $0x78] sm:$0xff] %v835_v21  ;;  %v857_v52 = vld [vmem:[#allocation2 + $0x8] sm:$0xff] (!%p1220_p13)  ;;  %v1002_v61 = vadd.f32 (!%p1220_p13), %v986_v45, %v970_v49  ;;  %v971_v9 = vmul.f32 (!%p1220_p13), %v906_v2, %v859_v51  ;;  %v867_v41 = vld [vmem:[#allocation2 + $0x58] sm:$0xff] (!%p1220_p13) }
 0x1c2   : > { %841 = vst [vmem:[#allocation2 + $0x28] sm:$0xff] %v825_v24  ;;  %849 = vst [vmem:[#allocation2 + $0x68] sm:$0xff] %v833_v25  ;;  %v1000_v62 = vadd.f32 (!%p1220_p13), %v984_v47, %v968_v50  ;;  %v969_v10 = vmul.f32 (!%p1220_p13), %v896_v3, %v857_v52  ;;  %v865_v31 = vld [vmem:[#allocation2 + $0x48] sm:$0xff] (!%p1220_p13) }
 0x1c3   : > { %v1018_v7 = vmul.f32 0.33333334, %v1002_v61  ;;  %v1003_v13 = vadd.f32 %v987_v53, %v971_v9 }
 0x1c4   : > { %v1016_v8 = vmul.f32 0.33333334, %v1000_v62  ;;  %v1001_v14 = vadd.f32 %v985_v54, %v969_v10  ;;  %v916_v15 = vpop.permute.xlu1 %915  ;;  %v911_v16 = vpop.permute.xlu0 %910 }
 0x1c5   : > { %1034 = vst [vmem:[%s1593_s8 + $0x10] sm:$0xff] %v1018_v7  ;;  %v1019_v17 = vmul.f32 0.33333334, %v1003_v13 }
 0x1c6   : > { %1032 = vst [vmem:[%s1593_s8] sm:$0xff] %v1016_v8  ;;  %v1017_v18 = vmul.f32 0.33333334, %v1001_v14  ;;  %v862_v22 = vld [vmem:[#allocation2 + $0x30] sm:$0xff] }
 0x1c7   : > { %v860_v12 = vld [vmem:[#allocation2 + $0x20] sm:$0xff]  ;;  %1035 = vst [vmem:[%s1593_s8 + $0x18] sm:$0xff] %v1019_v17  ;;  %v870_v62 = vld [vmem:[#allocation2 + $0x70] sm:$0xff] }
 0x1c8   : > { %v972_v20 = vmul.f32 %v911_v16, %v860_v12  ;;  %v863_v21 = vld [vmem:[#allocation2 + $0x38] sm:$0xff]  ;;  %1033 = vst [vmem:[%s1593_s8 + $0x8] sm:$0xff] %v1017_v18  ;;  %v926_v25 = vpop.permute.xlu1 %925  ;;  %v921_v26 = vpop.permute.xlu0 %920  ;;  %v868_v52 = vld [vmem:[#allocation2 + $0x60] sm:$0xff] }
 0x1c9   : > { %v861_v11 = vld [vmem:[#allocation2 + $0x28] sm:$0xff]  ;;  %v975_v29 = vmul.f32 %v926_v25, %v863_v21  ;;  %v974_v30 = vmul.f32 %v921_v26, %v862_v22  ;;  %v871_v61 = vld [vmem:[#allocation2 + $0x78] sm:$0xff] }
 0x1ca   : > { %v973_v19 = vmul.f32 %v916_v15, %v861_v11  ;;  %v1004_v24 = vadd.f32 %v988_v56, %v972_v20  ;;  %v869_v51 = vld [vmem:[#allocation2 + $0x68] sm:$0xff] }
 0x1cb   : > { %v1007_v33 = vadd.f32 %v991_v57, %v975_v29  ;;  %v1006_v34 = vadd.f32 %v990_v58, %v974_v30 }
 0x1cc   : > { %v1005_v23 = vadd.f32 %v989_v55, %v973_v19  ;;  %v1020_v28 = vmul.f32 0.33333334, %v1004_v24  ;;  %v936_v35 = vpop.permute.xlu1 %935  ;;  %v931_v36 = vpop.permute.xlu0 %930 }
 0x1cd   : > { %v1023_v37 = vmul.f32 0.33333334, %v1007_v33  ;;  %v1022_v38 = vmul.f32 0.33333334, %v1006_v34  ;;  %v977_v39 = vmul.f32 %v936_v35, %v865_v31  ;;  %v976_v40 = vmul.f32 %v931_v36, %v864_v32 }
 0x1ce   : > { %v1021_v27 = vmul.f32 0.33333334, %v1005_v23  ;;  %1036 = vst [vmem:[%s1593_s8 + $0x20] sm:$0xff] %v1020_v28 }
 0x1cf   : > { %v1009_v43 = vadd.f32 %v993_v59, %v977_v39  ;;  %v1008_v44 = vadd.f32 %v992_v60, %v976_v40  ;;  %1038 = vst [vmem:[%s1593_s8 + $0x30] sm:$0xff] %v1022_v38  ;;  %1039 = vst [vmem:[%s1593_s8 + $0x38] sm:$0xff] %v1023_v37 }
 0x1d0   : > { %1037 = vst [vmem:[%s1593_s8 + $0x28] sm:$0xff] %v1021_v27  ;;  %v946_v45 = vpop.permute.xlu1 %945  ;;  %v941_v46 = vpop.permute.xlu0 %940 }
 0x1d1   : > { %v1025_v47 = vmul.f32 0.33333334, %v1009_v43  ;;  %v1024_v48 = vmul.f32 0.33333334, %v1008_v44  ;;  %v979_v49 = vmul.f32 %v946_v45, %v867_v41  ;;  %v978_v50 = vmul.f32 %v941_v46, %v866_v42 }
 0x1d3   : > { %v1011_v53 = vadd.f32 %v995_v63, %v979_v49  ;;  %v1010_v54 = vadd.f32 %v994_v0, %v978_v50  ;;  %1040 = vst [vmem:[%s1593_s8 + $0x40] sm:$0xff] %v1024_v48  ;;  %1041 = vst [vmem:[%s1593_s8 + $0x48] sm:$0xff] %v1025_v47 }
 0x1d4   : > { %v956_v55 = vpop.permute.xlu1 %955  ;;  %v951_v56 = vpop.permute.xlu0 %950 }
 0x1d5   : > { %v1027_v57 = vmul.f32 0.33333334, %v1011_v53  ;;  %v1026_v58 = vmul.f32 0.33333334, %v1010_v54  ;;  %v981_v59 = vmul.f32 %v956_v55, %v869_v51  ;;  %v980_v60 = vmul.f32 %v951_v56, %v868_v52 }
 0x1d7   : > { %v1013_v2 = vadd.f32 %v1660_v1, %v981_v59  ;;  %v1012_v3 = vadd.f32 %v1663_v4, %v980_v60  ;;  %1042 = vst [vmem:[%s1593_s8 + $0x50] sm:$0xff] %v1026_v58  ;;  %1043 = vst [vmem:[%s1593_s8 + $0x58] sm:$0xff] %v1027_v57 }
 0x1d8   : > { %v966_v63 = vpop.permute.xlu1 %965 }
 0x1d9   : > { %v1029_v7 = vmul.f32 0.33333334, %v1013_v2  ;;  %v1028_v8 = vmul.f32 0.33333334, %v1012_v3  ;;  %v983_v9 = vmul.f32 %v966_v63, %v871_v61 }
 0x1db   : > { %v1015_v11 = vadd.f32 %v1666_v5, %v983_v9  ;;  %1044 = vst [vmem:[%s1593_s8 + $0x60] sm:$0xff] %v1028_v8  ;;  %1045 = vst [vmem:[%s1593_s8 + $0x68] sm:$0xff] %v1029_v7 }
 0x1dd   : > { %v1031_v13 = vmul.f32 0.33333334, %v1015_v11 }
 0x1df   : > { %1047 = vst [vmem:[%s1593_s8 + $0x78] sm:$0xff] %v1031_v13 }
 0x235   : > { %v961_v0 = vpop.permute.xlu0 %960 }
 0x236   : > { %v982_v10 = vmul.f32 %v961_v0, %v870_v62 }
 0x238   : > { %v1014_v12 = vadd.f32 %v1669_v6, %v982_v10 }
 0x23a   : > { %v1030_v1 = vmul.f32 0.33333334, %v1014_v12 }
 0x23c   : > { %1046 = vst [vmem:[%s1593_s8 + $0x70] sm:$0xff] %v1030_v1 }
 0x23d PF: > { %s15_s24 = sadd.s32 1, %s1452_s24   ;;  %s1718_s18 = smov %s1432_s19 }
 0x23e   : > { %p12_p0 = scmp.ge.s32.totalorder %s15_s24, 6   ;;  %s1719_s19 = smov %s1538_s6 }
 0x23f   : > { %s1720_s20 = smov %s1444_s22  ;;  %s1721_s21 = smov %s1448_s23 }
 0x240   : > { %s1722_s22 = smov %s1725_s25  ;;  %s1723_s23 = smov %s1729_s26 }
 0x241   :  { %14 = sbr.rel (!%p12_p0) target bundleno = 4 (0x4), region = 136 }

// kernel: rsgc_layer.4
= control target key start
LH: loop header
LB: loop body
LE: loop exit
PB: predicated region body
PF: predicated region fallthrough
CT: control target
= control target key end

     0   :  { %s1974_s0 = inlined_call_operand.vmem [shape: bf16[256,256], index: 0, kind: input, shape index: {}]   ;;  %s1975_s1 = inlined_call_operand.vmem [shape: bf16[256,128], index: 1, kind: input, shape index: {}]   ;;  %s1976_s2 = inlined_call_operand.vmem [shape: f32[256,1], index: 2, kind: input, shape index: {}, may-alias: {2,3}]   ;;  %s1977_s3 = inlined_call_operand.vmem [shape: f32[256,1], index: 3, kind: input, shape index: {}, may-alias: {2,3}]   ;;  %s1978_s4 = inlined_call_operand.vmem [shape: f32[256,128], index: 4, kind: input, shape index: {}, may-alias: {4,6}]   ;;  %s1979_s5 = inlined_call_operand.vmem [shape: bf16[256,128], index: 5, kind: output, shape index: {0}]   ;;  %s1980_s6 = inlined_call_operand.vmem [shape: f32[256,128], index: 6, kind: output, shape index: {1}, may-alias: {4,6}]  }
   0x1   :  { %1982 = sst [smem:[#allocation5_spill]] %s1974_s0 }
   0x2   :  { %s1730_s21 = smov 0   ;;  %s1732_s22 = smov 0  }
   0x3   :  { %s1734_s23 = smov 0   ;;  %s1736_s24 = smov 0  }
   0x4   :  { %s1738_s25 = smov 0   ;;  %s1740_s26 = smov 0  }
   0x5   :  { %s1742_s27 = smov 0  }
   0x6 LB: > { %s29_s28 = sadd.s32 1, %s1682_s25  ;;  %s36_s29 = sadd.s32 1, %s1686_s26  ;;  %s1690_s27 = sphi %s1742_s27, %s17_s27   ;;  %s1686_s26 = sphi %s1740_s26, %s1991_s26   ;;  %s1682_s25 = sphi %s1738_s25, %s1990_s25   ;;  %s1678_s24 = sphi %s1736_s24, %s1989_s24   ;;  %s1674_s23 = sphi %s1734_s23, %s1988_s23   ;;  %s1670_s22 = sphi %s1732_s22, %s1987_s22   ;;  %s1666_s21 = sphi %s1730_s21, %s1986_s21  }
   0x7   : > { %p30_p0 = scmp.ge.s32.totalorder %s29_s28, 2  ;;  %p52_p1 = scmp.ne.s32.totalorder %s1670_s22, %s1666_s21 }
   0x8   : > { %p53_p2 = scmp.eq.s32.totalorder %s1690_s27, 0  ;;  %s45_s9 = sadd.s32 1, %s1670_s22 }
   0x9   : > { %s1993_s28 = smov (%p30_p0, %s29_s28), 0  ;;  %s1995_s29 = smov (!%p30_p0, %s36_s29), %s1686_s26 }
   0xa   : > { %p54_p3 = por %p53_p2, %p52_p1  ;;  %p38_p4 = scmp.ge.s32.totalorder %s1995_s29, 2 }
   0xb   : > { %s41_s30 = ssub.s32 %s1682_s25, %s1993_s28  ;;  %p1351_p6 = scmp.ge.s32.totalorder %s1690_s27, 4 }
   0xc   : > { %s1997_s29 = smov (%p38_p4, %s1995_s29), 0 }
   0xd   : > { %1983 = sst [smem:[#allocation4_spill]] %s1997_s29  ;;  %s40_s7 = ssub.s32 %s1686_s26, %s1997_s29 }
   0xe   : > { %s42_s8 = sor.u32 %s41_s30, %s40_s7  ;;  %242 = sbr.rel (%p1351_p6) target bundleno = 41 (0x29), region = 16 }
   0xf   : > { %p43_p5 = scmp.eq.s32.totalorder %s42_s8, 0 }
  0x11   : > { %s1781_s10 = scalar_select %p43_p5, %s1670_s22, %s45_s9  }
  0x15   : > { %245 = sbr.rel (!%p54_p3) target bundleno = 41 (0x29), region = 20  ;;  %s247_s11 = sand.u32 (%p54_p3), 1, %s1670_s22  }
  0x16   : > { %s1398_s12 = sshll.u32 (%p54_p3), %s1686_s26, 5  ;;  %s1352_s13 = sshll.u32 (%p54_p3), %s247_s11, 6 }
  0x17   : > { %s252_s14 = sadd.s32 (%p54_p3), %s1682_s25, %s1398_s12  ;;  %s1984_s0 = sld [smem:[#allocation5_spill]] (%p54_p3) }
  0x18   : > { %s1355_s15 = sshll.u32 (%p54_p3), %s252_s14, 2  ;;  %s249_s19 = scalar_lea.vmem (%p54_p3), [#allocation3], %s1352_s13 }
  0x1d   : > { %s1790_s18 = scalar_lea.vmem %s1984_s0, %s1355_s15 }
  0x1e   : > { %v270_v0 = vld [vmem:[%s1790_s18] sm:$0xf]  ;;  %v272_v1 = vld [vmem:[%s1790_s18 + $0x8] sm:$0xf]  ;;  %v274_v2 = vld [vmem:[%s1790_s18 + $0x10] sm:$0xf] }
  0x1f   : > { %271 = vst [vmem:[%s249_s19] sm:$0xf] %v270_v0  ;;  %273 = vst [vmem:[%s249_s19 + $0x4] sm:$0xf] %v272_v1  ;;  %v276_v3 = vld [vmem:[%s1790_s18 + $0x18] sm:$0xf] }
  0x20   : > { %275 = vst [vmem:[%s249_s19 + $0x8] sm:$0xf] %v274_v2  ;;  %v278_v4 = vld [vmem:[%s1790_s18 + $0x20] sm:$0xf]  ;;  %v280_v5 = vld [vmem:[%s1790_s18 + $0x28] sm:$0xf] }
  0x21   : > { %277 = vst [vmem:[%s249_s19 + $0xc] sm:$0xf] %v276_v3  ;;  %279 = vst [vmem:[%s249_s19 + $0x10] sm:$0xf] %v278_v4  ;;  %v282_v6 = vld [vmem:[%s1790_s18 + $0x30] sm:$0xf] }
  0x22   : > { %281 = vst [vmem:[%s249_s19 + $0x14] sm:$0xf] %v280_v5  ;;  %v284_v7 = vld [vmem:[%s1790_s18 + $0x38] sm:$0xf]  ;;  %v286_v8 = vld [vmem:[%s1790_s18 + $0x40] sm:$0xf] }
  0x23   : > { %283 = vst [vmem:[%s249_s19 + $0x18] sm:$0xf] %v282_v6  ;;  %285 = vst [vmem:[%s249_s19 + $0x1c] sm:$0xf] %v284_v7  ;;  %v288_v9 = vld [vmem:[%s1790_s18 + $0x48] sm:$0xf] }
  0x24   : > { %287 = vst [vmem:[%s249_s19 + $0x20] sm:$0xf] %v286_v8  ;;  %v290_v10 = vld [vmem:[%s1790_s18 + $0x50] sm:$0xf]  ;;  %v292_v11 = vld [vmem:[%s1790_s18 + $0x58] sm:$0xf] }
  0x25   : > { %289 = vst [vmem:[%s249_s19 + $0x24] sm:$0xf] %v288_v9  ;;  %291 = vst [vmem:[%s249_s19 + $0x28] sm:$0xf] %v290_v10  ;;  %v294_v12 = vld [vmem:[%s1790_s18 + $0x60] sm:$0xf] }
  0x26   : > { %293 = vst [vmem:[%s249_s19 + $0x2c] sm:$0xf] %v292_v11  ;;  %v296_v13 = vld [vmem:[%s1790_s18 + $0x68] sm:$0xf]  ;;  %v298_v14 = vld [vmem:[%s1790_s18 + $0x70] sm:$0xf] }
  0x27   : > { %295 = vst [vmem:[%s249_s19 + $0x30] sm:$0xf] %v294_v12  ;;  %297 = vst [vmem:[%s249_s19 + $0x34] sm:$0xf] %v296_v13  ;;  %v300_v15 = vld [vmem:[%s1790_s18 + $0x78] sm:$0xf] }
  0x28   : > { %299 = vst [vmem:[%s249_s19 + $0x38] sm:$0xf] %v298_v14  ;;  %301 = vst [vmem:[%s249_s19 + $0x3c] sm:$0xf] %v300_v15 }
  0x29 PF: > { %p1356_p7 = scmp.ge.s32.totalorder %s1690_s27, 1  ;;  %p397_p8 = scmp.lt.s32.totalorder %s1690_s27, 5 }
  0x2b   : > { %p398_p9 = pnand %p1356_p7, %p397_p8 }
  0x2c   : > { %s404_s20 = sand.u32 (!%p398_p9), 1, %s1666_s21   ;;  %s1358_s30 = sshll.u32 (!%p398_p9), %s1674_s23, 4 }
  0x2d   : > { %401 = sbr.rel (%p398_p9) target bundleno = 581 (0x245), region = 77  ;;  %s1357_s7 = sshll.u32 (!%p398_p9), %s404_s20, 6 }
  0x2e   : > { %p472_p10 = scmp.lt.s32.totalorder (!%p398_p9), %s1358_s30, 31  ;;  %s1362_s8 = sshll.u32 (!%p398_p9), %s1678_s24, 4 }
  0x2f   : > { %p487_p11 = scmp.lt.s32.totalorder (!%p398_p9), %s1362_s8, 31  ;;  %p1370_p12 = scmp.ne.s32.totalorder (!%p398_p9), %s1674_s23, 0 }
  0x34   : > { %s1999_s30 = smov (!%p472_p10, %s1358_s30), 31  ;;  %s2001_s8 = smov (!%p487_p11, %s1362_s8), 31 }
  0x35   : > { %s1359_s9 = sshll.u32 %s1999_s30, 2  ;;  %s1361_s11 = sshll.u32 %s1999_s30, 3  ;;  %v1692_v16 = vmov (!%p1370_p12), 0.0  }
  0x36   : > { %s1816_s14 = scalar_lea.vmem %s1975_s1, %s1359_s9  ;;  %s1821_s17 = scalar_lea.vmem %s1976_s2, %s1361_s11  ;;  %524 = vst [vmem:[#allocation2] sm:$0xff] (!%p1370_p12), %v1692_v16  ;;  %525 = vst [vmem:[#allocation2 + $0x8] sm:$0xff] (!%p1370_p12), %v1692_v16 }
  0x37   : > { %s1363_s21 = sshll.u32 %s2001_s8, 3  ;;  %s1367_s18 = sshll.u32 %s2001_s8, 2  ;;  %526 = vst [vmem:[#allocation2 + $0x10] sm:$0xff] (!%p1370_p12), %v1692_v16  ;;  %527 = vst [vmem:[#allocation2 + $0x18] sm:$0xff] (!%p1370_p12), %v1692_v16 }
  0x38   : > { %s1826_s24 = scalar_lea.vmem %s1977_s3, %s1363_s21  ;;  %s1831_s29 = scalar_lea.vmem %s1978_s4, %s1363_s21  ;;  %528 = vst [vmem:[#allocation2 + $0x20] sm:$0xff] (!%p1370_p12), %v1692_v16  ;;  %529 = vst [vmem:[#allocation2 + $0x28] sm:$0xff] (!%p1370_p12), %v1692_v16 }
  0x39   : > { %s1836_s13 = scalar_lea.vmem %s1979_s5, %s1367_s18  ;;  %s1841_s16 = scalar_lea.vmem %s1980_s6, %s1363_s21  ;;  %530 = vst [vmem:[#allocation2 + $0x30] sm:$0xff] (!%p1370_p12), %v1692_v16  ;;  %531 = vst [vmem:[#allocation2 + $0x38] sm:$0xff] (!%p1370_p12), %v1692_v16 }
  0x3a   : > { %s1843_s8 = scalar_lea.vmem [#allocation3], %s1357_s7  ;;  %523 = sbr.rel (%p1370_p12) target bundleno = 65 (0x41), region = 85  ;;  %532 = vst [vmem:[#allocation2 + $0x40] sm:$0xff] (!%p1370_p12), %v1692_v16  ;;  %533 = vst [vmem:[#allocation2 + $0x48] sm:$0xff] (!%p1370_p12), %v1692_v16 }
  0x3b   : > { %534 = vst [vmem:[#allocation2 + $0x50] sm:$0xff] (!%p1370_p12), %v1692_v16  ;;  %535 = vst [vmem:[#allocation2 + $0x58] sm:$0xff] (!%p1370_p12), %v1692_v16 }
  0x3c   : > { %536 = vst [vmem:[#allocation2 + $0x60] sm:$0xff] (!%p1370_p12), %v1692_v16  ;;  %537 = vst [vmem:[#allocation2 + $0x68] sm:$0xff] (!%p1370_p12), %v1692_v16 }
  0x3d   : > { %538 = vst [vmem:[#allocation2 + $0x70] sm:$0xff] (!%p1370_p12), %v1692_v16  ;;  %539 = vst [vmem:[#allocation2 + $0x78] sm:$0xff] (!%p1370_p12), %v1692_v16 }
  0x41 PF: > { %v574_v17 = vld [vmem:[%s1821_s17 + $0x10] sm:$0xff]  ;;  %v572_v18 = vld [vmem:[%s1821_s17] sm:$0xff]  ;;  %v1693_v19 = vmov 0   ;;  %v575_v20 = vld [vmem:[%s1821_s17 + $0x18] sm:$0xff]  ;;  %p1379_p13 = scmp.ne.s32.totalorder %s1674_s23, 1 }
  0x42   : > { %1625 = vset.pattern.permute.xlu1 %v1693_v19  ;;  %1624 = vset.pattern.permute.xlu0 %v1693_v19  ;;  %v573_v21 = vld [vmem:[%s1821_s17 + $0x8] sm:$0xff]  ;;  %v576_v23 = vld [vmem:[%s1821_s17 + $0x20] sm:$0xff]  ;;  %v579_v24 = vld [vmem:[%s1821_s17 + $0x38] sm:$0xff] }
  0x43   : > { %600 = vperm.xlu1 %1625, %v574_v17   ;;  %590 = vperm.xlu0 %1624, %v572_v18   ;;  %v577_v22 = vld [vmem:[%s1821_s17 + $0x28] sm:$0xff]  ;;  %v578_v25 = vld [vmem:[%s1821_s17 + $0x30] sm:$0xff]  ;;  %v580_v27 = vld [vmem:[%s1821_s17 + $0x40] sm:$0xff] }
  0x44   : > { %v581_v26 = vld [vmem:[%s1821_s17 + $0x48] sm:$0xff]  ;;  %v583_v28 = vld [vmem:[%s1821_s17 + $0x58] sm:$0xff]  ;;  %v582_v29 = vld [vmem:[%s1821_s17 + $0x50] sm:$0xff] }
  0x45   : > { %v585_v30 = vld [vmem:[%s1821_s17 + $0x68] sm:$0xff]  ;;  %v584_v31 = vld [vmem:[%s1821_s17 + $0x60] sm:$0xff]  ;;  %v587_v32 = vld [vmem:[%s1821_s17 + $0x78] sm:$0xff] }
  0x46   : > { %v586_v33 = vld [vmem:[%s1821_s17 + $0x70] sm:$0xff]  ;;  %v1626_v34 = vld [vmem:[%s1843_s8] sm:$0xff]   ;;  %v1487_v36 = vld [vmem:[%s1816_s14 + $0x8] sm:$0xff]  }
  0x47   : > { %605 = vperm.xlu1 %1625, %v575_v20   ;;  %595 = vperm.xlu0 %1624, %v573_v21   ;;  %v1627_v35 = vld [vmem:[%s1843_s8 + $0x20] sm:$0xff]   ;;  %v1421_v40 = vunpack.c.l.bf16 %v1487_v36  ;;  %v1422_v42 = vunpack.c.h.bf16 %v1487_v36  ;;  %v1488_v44 = vld [vmem:[%s1816_s14 + $0x10] sm:$0xff]   ;;  %v1489_v53 = vld [vmem:[%s1816_s14 + $0x18] sm:$0xff]  }
  0x48   : > { %1533 = vmatprep.mubr.bf16.mxu0 %v1626_v34  ;;  %1541 = vmatprep.mubr.bf16.mxu1 %v1627_v35  ;;  %v1416_v37 = vld [vmem:[%s1816_s14] sm:$0xff]   ;;  %v1426_v47 = vunpack.c.h.bf16 %v1488_v44  ;;  %v1425_v48 = vunpack.c.l.bf16 %v1488_v44  ;;  %v1430_v57 = vunpack.c.h.bf16 %v1489_v53  ;;  %v1429_v61 = vunpack.c.l.bf16 %v1489_v53  ;;  %v1491_v6 = vld [vmem:[%s1816_s14 + $0x28] sm:$0xff]   ;;  %v1492_v14 = vld [vmem:[%s1816_s14 + $0x30] sm:$0xff]  }
  0x49   : > { %v1417_v41 = vunpack.c.l.bf16 %v1416_v37  ;;  %v1418_v43 = vunpack.c.h.bf16 %v1416_v37  ;;  %v1490_v62 = vld [vmem:[%s1816_s14 + $0x20] sm:$0xff]   ;;  %v1438_v9 = vunpack.c.h.bf16 %v1491_v6  ;;  %v1437_v13 = vunpack.c.l.bf16 %v1491_v6  ;;  %v1628_v36 = vld [vmem:[%s1843_s8 + $0x8] sm:$0xff]  }
  0x4a   : > { %v1434_v1 = vunpack.c.h.bf16 %v1490_v62  ;;  %v1433_v5 = vunpack.c.l.bf16 %v1490_v62  ;;  %v1442_v17 = vunpack.c.h.bf16 %v1492_v14  ;;  %v1441_v21 = vunpack.c.l.bf16 %v1492_v14  ;;  %v1629_v37 = vld [vmem:[%s1843_s8 + $0x28] sm:$0xff]   ;;  %v692_v44 = vld [vmem:[#allocation2] sm:$0xff] }
  0x4b   : > { %615 = vperm.xlu1 %1625, %v577_v22   ;;  %610 = vperm.xlu0 %1624, %v576_v23   ;;  %v1493_v22 = vld [vmem:[%s1816_s14 + $0x38] sm:$0xff]   ;;  %v697_v14 = vld [vmem:[#allocation2 + $0x28] sm:$0xff] }
  0x4f   : > { %625 = vperm.xlu1 %1625, %v579_v24   ;;  %620 = vperm.xlu0 %1624, %v578_v25   ;;  %v1446_v25 = vunpack.c.h.bf16 %v1493_v22 }
  0x53   : > { %635 = vperm.xlu1 %1625, %v581_v26   ;;  %630 = vperm.xlu0 %1624, %v580_v27  }
  0x57   : > { %645 = vperm.xlu1 %1625, %v583_v28   ;;  %640 = vperm.xlu0 %1624, %v582_v29   ;;  %v1445_v29 = vunpack.c.l.bf16 %v1493_v22 }
  0x5b   : > { %655 = vperm.xlu1 %1625, %v585_v30   ;;  %650 = vperm.xlu0 %1624, %v584_v31  }
  0x5f   : > { %665 = vperm.xlu1 %1625, %v587_v32   ;;  %660 = vperm.xlu0 %1624, %v586_v33  }
  0xc2   : > { %v601_v38 = vpop.permute.xlu1 %600  ;;  %v591_v39 = vpop.permute.xlu0 %590 }
  0xc3   : > { %v670_v49 = vmul.f32 %v1421_v40, %v601_v38  ;;  %v668_v50 = vmul.f32 %v1417_v41, %v591_v39  ;;  %v1630_v38 = vld [vmem:[%s1843_s8 + $0x10] sm:$0xff]   ;;  %v1632_v40 = vld [vmem:[%s1843_s8 + $0x18] sm:$0xff]  }
  0xc4   : > { %v1631_v39 = vld [vmem:[%s1843_s8 + $0x30] sm:$0xff]   ;;  %v1633_v41 = vld [vmem:[%s1843_s8 + $0x38] sm:$0xff]  }
  0xc6   : > { %v606_v45 = vpop.permute.xlu1 %605  ;;  %v596_v46 = vpop.permute.xlu0 %595 }
  0xc7   : > { %v671_v51 = vmul.f32 %v1422_v42, %v606_v45  ;;  %v669_v52 = vmul.f32 %v1418_v43, %v596_v46  ;;  %v694_v42 = vld [vmem:[#allocation2 + $0x10] sm:$0xff]  ;;  %v700_v45 = vld [vmem:[#allocation2 + $0x40] sm:$0xff] }
  0xc8   : > { %v702_v43 = vld [vmem:[#allocation2 + $0x50] sm:$0xff] }
  0xc9   : > { %v684_v54 = vpack.c.bf16 %v669_v52, %v668_v50  ;;  %v685_v58 = vpack.c.bf16 %v671_v51, %v670_v49  ;;  %v703_v49 = vld [vmem:[#allocation2 + $0x58] sm:$0xff] }
  0xca   : > { %v616_v55 = vpop.permute.xlu1 %615  ;;  %v611_v56 = vpop.permute.xlu0 %610 }
  0xcb   : > { %v673_v59 = vmul.f32 %v1426_v47, %v616_v55  ;;  %v672_v60 = vmul.f32 %v1425_v48, %v611_v56  ;;  %1517 = vmatprep.subr.bf16.mxu0 %v684_v54  ;;  %1549 = vmatprep.subr.bf16.mxu1 %v684_v54  ;;  %v695_v48 = vld [vmem:[#allocation2 + $0x18] sm:$0xff]  ;;  %v701_v55 = vld [vmem:[#allocation2 + $0x48] sm:$0xff] }
  0xcc   : > { %1518 = vmatpush3.bf16.msra.mxu0 %v684_v54  ;;  %1557 = vmatpush3.bf16.msra.mxu1 %v684_v54  ;;  %v693_v54 = vld [vmem:[#allocation2 + $0x8] sm:$0xff] }
  0xcd   : > { %1519 = vmatprep.subr.bf16.mxu0 %v685_v58  ;;  %1550 = vmatprep.subr.bf16.mxu1 %v685_v58  ;;  %v686_v2 = vpack.c.bf16 %v673_v59, %v672_v60 }
  0xce   : > { %v626_v63 = vpop.permute.xlu1 %625  ;;  %v621_v0 = vpop.permute.xlu0 %620 }
  0xcf   : > { %v675_v3 = vmul.f32 %v1430_v57, %v626_v63  ;;  %v674_v4 = vmul.f32 %v1429_v61, %v621_v0 }
  0xd0   : > { %1520 = vmatpush3.bf16.msra.mxu0 %v685_v58  ;;  %1558 = vmatpush3.bf16.msra.mxu1 %v685_v58 }
  0xd1   : > { %1521 = vmatprep.subr.bf16.mxu0 %v686_v2  ;;  %1551 = vmatprep.subr.bf16.mxu1 %v686_v2  ;;  %v687_v10 = vpack.c.bf16 %v675_v3, %v674_v4  ;;  %v706_v3 = vld [vmem:[#allocation2 + $0x70] sm:$0xff]  ;;  %v696_v4 = vld [vmem:[#allocation2 + $0x20] sm:$0xff] }
  0xd2   : > { %v636_v7 = vpop.permute.xlu1 %635  ;;  %v631_v8 = vpop.permute.xlu0 %630 }
  0xd3   : > { %v677_v11 = vmul.f32 %v1434_v1, %v636_v7  ;;  %v676_v12 = vmul.f32 %v1433_v5, %v631_v8  ;;  %v704_v5 = vld [vmem:[#allocation2 + $0x60] sm:$0xff]  ;;  %v699_v8 = vld [vmem:[#allocation2 + $0x38] sm:$0xff] }
  0xd4   : > { %1522 = vmatpush3.bf16.msra.mxu0 %v686_v2  ;;  %1559 = vmatpush3.bf16.msra.mxu1 %v686_v2  ;;  %v698_v2 = vld [vmem:[#allocation2 + $0x30] sm:$0xff] }
  0xd5   : > { %1523 = vmatprep.subr.bf16.mxu0 %v687_v10  ;;  %1552 = vmatprep.subr.bf16.mxu1 %v687_v10  ;;  %v688_v18 = vpack.c.bf16 %v677_v11, %v676_v12 }
  0xd6   : > { %v646_v15 = vpop.permute.xlu1 %645  ;;  %v641_v16 = vpop.permute.xlu0 %640 }
  0xd7   : > { %v679_v19 = vmul.f32 %v1438_v9, %v646_v15  ;;  %v678_v20 = vmul.f32 %v1437_v13, %v641_v16  ;;  %v707_v9 = vld [vmem:[#allocation2 + $0x78] sm:$0xff]  ;;  %v705_v15 = vld [vmem:[#allocation2 + $0x68] sm:$0xff] }
  0xd8   : > { %1524 = vmatpush3.bf16.msra.mxu0 %v687_v10  ;;  %1560 = vmatpush3.bf16.msra.mxu1 %v687_v10 }
  0xd9   : > { %1525 = vmatprep.subr.bf16.mxu0 %v688_v18  ;;  %1553 = vmatprep.subr.bf16.mxu1 %v688_v18  ;;  %v689_v26 = vpack.c.bf16 %v679_v19, %v678_v20 }
  0xda   : > { %v656_v23 = vpop.permute.xlu1 %655  ;;  %v651_v24 = vpop.permute.xlu0 %650 }
  0xdb   : > { %v681_v27 = vmul.f32 %v1442_v17, %v656_v23  ;;  %v680_v28 = vmul.f32 %v1441_v21, %v651_v24 }
  0xdc   : > { %1526 = vmatpush3.bf16.msra.mxu0 %v688_v18  ;;  %1561 = vmatpush3.bf16.msra.mxu1 %v688_v18 }
  0xdd   : > { %1527 = vmatprep.subr.bf16.mxu0 %v689_v26  ;;  %1554 = vmatprep.subr.bf16.mxu1 %v689_v26  ;;  %v690_v32 = vpack.c.bf16 %v681_v27, %v680_v28  ;;  %v921_v27 = vld [vmem:[%s1826_s24] sm:$0xff] (!%p1379_p13)  ;;  %v1694_v28 = vmov (!%p1379_p13), 0  }
  0xde   : > { %v666_v30 = vpop.permute.xlu1 %665  ;;  %v661_v31 = vpop.permute.xlu0 %660  ;;  %1635 = vset.pattern.permute.xlu1 (!%p1379_p13), %v1694_v28  ;;  %1634 = vset.pattern.permute.xlu0 (!%p1379_p13), %v1694_v28 }
  0xdf   : > { %v683_v33 = vmul.f32 %v1446_v25, %v666_v30  ;;  %v682_v34 = vmul.f32 %v1445_v29, %v661_v31  ;;  %939 = vperm.xlu0 (!%p1379_p13), %1634, %v921_v27   ;;  %v924_v29 = vld [vmem:[%s1826_s24 + $0x18] sm:$0xff] (!%p1379_p13)  ;;  %v922_v30 = vld [vmem:[%s1826_s24 + $0x8] sm:$0xff] (!%p1379_p13) }
  0xe0   : > { %1528 = vmatpush3.bf16.msra.mxu0 %v689_v26  ;;  %1562 = vmatpush3.bf16.msra.mxu1 %v689_v26  ;;  %v923_v26 = vld [vmem:[%s1826_s24 + $0x10] sm:$0xff] (!%p1379_p13)  ;;  %v926_v31 = vld [vmem:[%s1826_s24 + $0x28] sm:$0xff] (!%p1379_p13) }
  0xe1   : > { %1529 = vmatprep.subr.bf16.mxu0 %v690_v32  ;;  %1555 = vmatprep.subr.bf16.mxu1 %v690_v32  ;;  %v691_v35 = vpack.c.bf16 %v683_v33, %v682_v34  ;;  %v928_v33 = vld [vmem:[%s1826_s24 + $0x38] sm:$0xff] (!%p1379_p13)  ;;  %v927_v34 = vld [vmem:[%s1826_s24 + $0x30] sm:$0xff] (!%p1379_p13) }
  0xe2   : > { %949 = vperm.xlu1 (!%p1379_p13), %1635, %v923_v26  }
  0xe3   : > { %944 = vperm.xlu0 (!%p1379_p13), %1634, %v922_v30  }
  0xe4   : > { %1530 = vmatpush3.bf16.msra.mxu0 %v690_v32  ;;  %1563 = vmatpush3.bf16.msra.mxu1 %v690_v32  ;;  %v925_v32 = vld [vmem:[%s1826_s24 + $0x20] sm:$0xff] (!%p1379_p13) }
  0xe5   : > { %1531 = vmatprep.subr.bf16.mxu0 %v691_v35  ;;  %1556 = vmatprep.subr.bf16.mxu1 %v691_v35 }
  0xe6   : > { %954 = vperm.xlu1 (!%p1379_p13), %1635, %v924_v29  }
  0xe7   : > { %959 = vperm.xlu0 (!%p1379_p13), %1634, %v925_v32  }
  0xe8   : > { %1532 = vmatpush3.bf16.msra.mxu0 %v691_v35  ;;  %1564 = vmatpush3.bf16.msra.mxu1 %v691_v35  ;;  %v930_v35 = vld [vmem:[%s1826_s24 + $0x48] sm:$0xff] (!%p1379_p13) }
  0xea   : > { %964 = vperm.xlu1 (!%p1379_p13), %1635, %v926_v31  }
  0xeb   : > { %1534 = vmatmul.mubr.bf16.vlgmr.msra.gmra.mrb[0].mxu0 %v1628_v36  ;;  %1542 = vmatmul.mubr.bf16.vlgmr.msra.gmra.mrb[0].mxu1 %v1629_v37  ;;  %v929_v36 = vld [vmem:[%s1826_s24 + $0x40] sm:$0xff] (!%p1379_p13)  ;;  %v932_v37 = vld [vmem:[%s1826_s24 + $0x58] sm:$0xff] (!%p1379_p13) }
  0xec   : > { %1537 = vmatprep.mubr.bf16.mxu0 %v1630_v38  ;;  %1545 = vmatprep.mubr.bf16.mxu1 %v1631_v39  ;;  %v931_v38 = vld [vmem:[%s1826_s24 + $0x50] sm:$0xff] (!%p1379_p13)  ;;  %v934_v39 = vld [vmem:[%s1826_s24 + $0x68] sm:$0xff] (!%p1379_p13) }
  0xed   : > { %969 = vperm.xlu0 (!%p1379_p13), %1634, %v927_v34  }
  0xee   : > { %974 = vperm.xlu1 (!%p1379_p13), %1635, %v928_v33  }
  0xf1   : > { %979 = vperm.xlu0 (!%p1379_p13), %1634, %v929_v36  }
  0xf2   : > { %984 = vperm.xlu1 (!%p1379_p13), %1635, %v930_v35  }
  0xf3   : > { %1538 = vmatmul.mubr.bf16.gmra.mrb[4].mxu0 %v1632_v40  ;;  %1546 = vmatmul.mubr.bf16.gmra.mrb[4].mxu1 %v1633_v41  ;;  %v933_v40 = vld [vmem:[%s1826_s24 + $0x60] sm:$0xff] (!%p1379_p13)  ;;  %v936_v41 = vld [vmem:[%s1826_s24 + $0x78] sm:$0xff] (!%p1379_p13) }
  0xf5   : > { %989 = vperm.xlu0 (!%p1379_p13), %1634, %v931_v38  }
  0xf6   : > { %994 = vperm.xlu1 (!%p1379_p13), %1635, %v932_v37  }
  0xf9   : > { %999 = vperm.xlu0 (!%p1379_p13), %1634, %v933_v40  }
  0xfa   : > { %1004 = vperm.xlu1 (!%p1379_p13), %1635, %v934_v39  }
  0xfe   : > { %1014 = vperm.xlu1 (!%p1379_p13), %1635, %v936_v41  }
 0x1be   : > { %v1535_v46 = vpop.f32.mrb[0].mxu0  ;;  %v1543_v47 = vpop.f32.mrb[0].mxu1 }
 0x1bf   : > { %v871_v50 = vadd.f32 %v1535_v46, %v694_v42  ;;  %v879_v51 = vadd.f32 %v1543_v47, %v702_v43  ;;  %v806_v52 = vpop.f32.mrb[1].mxu0  ;;  %v838_v53 = vpop.f32.mrb[1].mxu1  ;;  %v935_v42 = vld [vmem:[%s1826_s24 + $0x70] sm:$0xff] (!%p1379_p13)  ;;  %v1113_v46 = vld [vmem:[%s1831_s29] sm:$0xff] (!%p1379_p13) }
 0x1c0   : > { %v869_v56 = vadd.f32 %v806_v52, %v692_v44  ;;  %v877_v57 = vadd.f32 %v838_v53, %v700_v45  ;;  %v1536_v58 = vpop.f32.mrb[2].mxu0  ;;  %v1544_v59 = vpop.f32.mrb[2].mxu1  ;;  %1009 = vperm.xlu0 (!%p1379_p13), %1634, %v935_v42   ;;  %v1115_v45 = vld [vmem:[%s1831_s29 + $0x10] sm:$0xff] (!%p1379_p13)  ;;  %v1118_v53 = vld [vmem:[%s1831_s29 + $0x28] sm:$0xff] (!%p1379_p13) }
 0x1c1   : > { %887 = vst [vmem:[#allocation2 + $0x10] sm:$0xff] %v871_v50  ;;  %895 = vst [vmem:[#allocation2 + $0x50] sm:$0xff] %v879_v51  ;;  %v872_v60 = vadd.f32 %v1536_v58, %v695_v48  ;;  %v880_v61 = vadd.f32 %v1544_v59, %v703_v49  ;;  %v809_v62 = vpop.f32.mrb[3].mxu0  ;;  %v841_v63 = vpop.f32.mrb[3].mxu1  ;;  %v1116_v49 = vld [vmem:[%s1831_s29 + $0x18] sm:$0xff] (!%p1379_p13)  ;;  %v1114_v51 = vld [vmem:[%s1831_s29 + $0x8] sm:$0xff] (!%p1379_p13) }
 0x1c2   : > { %885 = vst [vmem:[#allocation2] sm:$0xff] %v869_v56  ;;  %893 = vst [vmem:[#allocation2 + $0x40] sm:$0xff] %v877_v57  ;;  %v870_v0 = vadd.f32 %v809_v62, %v693_v54  ;;  %v878_v1 = vadd.f32 %v841_v63, %v701_v55  ;;  %v950_v47 = vpop.permute.xlu1 (!%p1379_p13), %949  ;;  %v940_v48 = vpop.permute.xlu0 (!%p1379_p13), %939  ;;  %v1117_v54 = vld [vmem:[%s1831_s29 + $0x20] sm:$0xff] (!%p1379_p13)  ;;  %v1120_v55 = vld [vmem:[%s1831_s29 + $0x38] sm:$0xff] (!%p1379_p13) }
 0x1c3   : > { %888 = vst [vmem:[#allocation2 + $0x18] sm:$0xff] %v872_v60  ;;  %896 = vst [vmem:[#allocation2 + $0x58] sm:$0xff] %v880_v61  ;;  %v1119_v56 = vld [vmem:[%s1831_s29 + $0x30] sm:$0xff] (!%p1379_p13)  ;;  %v1122_v57 = vld [vmem:[%s1831_s29 + $0x48] sm:$0xff] (!%p1379_p13) }
 0x1c4   : > { %886 = vst [vmem:[#allocation2 + $0x8] sm:$0xff] %v870_v0  ;;  %894 = vst [vmem:[#allocation2 + $0x48] sm:$0xff] %v878_v1  ;;  %v1121_v58 = vld [vmem:[%s1831_s29 + $0x40] sm:$0xff] (!%p1379_p13)  ;;  %v1906_v61 = vld [vmem:[%s1831_s29 + $0x58] sm:$0xff] (!%p1379_p13) }
 0x1c5   : > { %v1909_v62 = vld [vmem:[%s1831_s29 + $0x50] sm:$0xff] (!%p1379_p13)  ;;  %v1912_v63 = vld [vmem:[%s1831_s29 + $0x68] sm:$0xff] (!%p1379_p13)  ;;  %v1915_v0 = vld [vmem:[%s1831_s29 + $0x60] sm:$0xff] (!%p1379_p13) }
 0x1c6   : > { %v1539_v6 = vpop.f32.mrb[4].mxu0  ;;  %v1547_v7 = vpop.f32.mrb[4].mxu1  ;;  %904 = sbr.rel (%p1379_p13) target bundleno = 581 (0x245), region = 89  ;;  %v1918_v1 = vld [vmem:[%s1831_s29 + $0x78] sm:$0xff] (!%p1379_p13) }
 0x1c7   : > { %v875_v10 = vadd.f32 %v1539_v6, %v698_v2  ;;  %v883_v11 = vadd.f32 %v1547_v7, %v706_v3  ;;  %v822_v12 = vpop.f32.mrb[5].mxu0  ;;  %v854_v13 = vpop.f32.mrb[5].mxu1  ;;  %v1921_v2 = vld [vmem:[%s1831_s29 + $0x70] sm:$0xff] (!%p1379_p13) }
 0x1c8   : > { %v873_v16 = vadd.f32 %v822_v12, %v696_v4  ;;  %v881_v17 = vadd.f32 %v854_v13, %v704_v5  ;;  %v1540_v18 = vpop.f32.mrb[6].mxu0  ;;  %v1548_v19 = vpop.f32.mrb[6].mxu1  ;;  %v907_v43 = vld [vmem:[#allocation2 + $0x10] sm:$0xff] (!%p1379_p13) }
 0x1c9   : > { %891 = vst [vmem:[#allocation2 + $0x30] sm:$0xff] %v875_v10  ;;  %899 = vst [vmem:[#allocation2 + $0x70] sm:$0xff] %v883_v11  ;;  %v876_v20 = vadd.f32 %v1540_v18, %v699_v8  ;;  %v884_v21 = vadd.f32 %v1548_v19, %v707_v9  ;;  %v825_v22 = vpop.f32.mrb[7].mxu0  ;;  %v857_v23 = vpop.f32.mrb[7].mxu1  ;;  %v905_v44 = vld [vmem:[#allocation2] sm:$0xff] (!%p1379_p13)  ;;  %v1019_v59 = vmul.f32 (!%p1379_p13), %v950_v47, %v907_v43  ;;  %v915_v38 = vld [vmem:[#allocation2 + $0x50] sm:$0xff] (!%p1379_p13) }
 0x1ca   : > { %889 = vst [vmem:[#allocation2 + $0x20] sm:$0xff] %v873_v16  ;;  %897 = vst [vmem:[#allocation2 + $0x60] sm:$0xff] %v881_v17  ;;  %v874_v24 = vadd.f32 %v825_v22, %v697_v14  ;;  %v882_v25 = vadd.f32 %v857_v23, %v705_v15  ;;  %v908_v50 = vld [vmem:[#allocation2 + $0x18] sm:$0xff] (!%p1379_p13)  ;;  %v1017_v60 = vmul.f32 (!%p1379_p13), %v940_v48, %v905_v44  ;;  %v955_v5 = vpop.permute.xlu1 (!%p1379_p13), %954  ;;  %v945_v6 = vpop.permute.xlu0 (!%p1379_p13), %944  ;;  %v913_v29 = vld [vmem:[#allocation2 + $0x40] sm:$0xff] (!%p1379_p13) }
 0x1cb   : > { %892 = vst [vmem:[#allocation2 + $0x38] sm:$0xff] %v876_v20  ;;  %900 = vst [vmem:[#allocation2 + $0x78] sm:$0xff] %v884_v21  ;;  %v906_v52 = vld [vmem:[#allocation2 + $0x8] sm:$0xff] (!%p1379_p13)  ;;  %v1131_v3 = vadd.f32 (!%p1379_p13), %v1115_v45, %v1019_v59  ;;  %v1020_v7 = vmul.f32 (!%p1379_p13), %v955_v5, %v908_v50  ;;  %v916_v37 = vld [vmem:[#allocation2 + $0x58] sm:$0xff] (!%p1379_p13) }
 0x1cc   : > { %890 = vst [vmem:[#allocation2 + $0x28] sm:$0xff] %v874_v24  ;;  %898 = vst [vmem:[#allocation2 + $0x68] sm:$0xff] %v882_v25  ;;  %v1129_v4 = vadd.f32 (!%p1379_p13), %v1113_v46, %v1017_v60  ;;  %v1018_v8 = vmul.f32 (!%p1379_p13), %v945_v6, %v906_v52  ;;  %v914_v28 = vld [vmem:[#allocation2 + $0x48] sm:$0xff] (!%p1379_p13) }
 0x1cd   : > { %1147 = vst [vmem:[%s1841_s16 + $0x10] sm:$0xff] %v1131_v3  ;;  %v1455_v11 = vpack.c.bf16 %v1020_v7, %v1019_v59  ;;  %v1132_v12 = vadd.f32 %v1116_v49, %v1020_v7 }
 0x1ce   : > { %1145 = vst [vmem:[%s1841_s16] sm:$0xff] %v1129_v4  ;;  %v1450_v13 = vpack.c.bf16 %v1018_v8, %v1017_v60  ;;  %v1130_v14 = vadd.f32 %v1114_v51, %v1018_v8  ;;  %v965_v15 = vpop.permute.xlu1 %964  ;;  %v960_v16 = vpop.permute.xlu0 %959 }
 0x1cf   : > { %1494 = vst [vmem:[%s1836_s13 + $0x8] sm:$0xff] %v1455_v11   ;;  %1148 = vst [vmem:[%s1841_s16 + $0x18] sm:$0xff] %v1132_v12 }
 0x1d0   : > { %1451 = vst [vmem:[%s1836_s13] sm:$0xff] %v1450_v13   ;;  %1146 = vst [vmem:[%s1841_s16 + $0x8] sm:$0xff] %v1130_v14  ;;  %v911_v20 = vld [vmem:[#allocation2 + $0x30] sm:$0xff] }
 0x1d1   : > { %v909_v10 = vld [vmem:[#allocation2 + $0x20] sm:$0xff] }
 0x1d2   : > { %v1021_v18 = vmul.f32 %v960_v16, %v909_v10  ;;  %v912_v19 = vld [vmem:[#allocation2 + $0x38] sm:$0xff]  ;;  %v975_v24 = vpop.permute.xlu1 %974  ;;  %v970_v25 = vpop.permute.xlu0 %969  ;;  %v917_v47 = vld [vmem:[#allocation2 + $0x60] sm:$0xff] }
 0x1d3   : > { %v910_v9 = vld [vmem:[#allocation2 + $0x28] sm:$0xff]  ;;  %v1024_v26 = vmul.f32 %v975_v24, %v912_v19  ;;  %v1023_v27 = vmul.f32 %v970_v25, %v911_v20 }
 0x1d4   : > { %v1022_v17 = vmul.f32 %v965_v15, %v910_v9  ;;  %v1133_v23 = vadd.f32 %v1117_v54, %v1021_v18  ;;  %v918_v46 = vld [vmem:[#allocation2 + $0x68] sm:$0xff] }
 0x1d5   : > { %v1136_v30 = vadd.f32 %v1120_v55, %v1024_v26  ;;  %v1465_v31 = vpack.c.bf16 %v1024_v26, %v1023_v27  ;;  %v1135_v32 = vadd.f32 %v1119_v56, %v1023_v27  ;;  %v920_v55 = vld [vmem:[#allocation2 + $0x78] sm:$0xff]  ;;  %v919_v56 = vld [vmem:[#allocation2 + $0x70] sm:$0xff] }
 0x1d6   : > { %v1134_v21 = vadd.f32 %v1118_v53, %v1022_v17  ;;  %v1460_v22 = vpack.c.bf16 %v1022_v17, %v1021_v18  ;;  %1149 = vst [vmem:[%s1841_s16 + $0x20] sm:$0xff] %v1133_v23  ;;  %v985_v33 = vpop.permute.xlu1 %984  ;;  %v980_v34 = vpop.permute.xlu0 %979 }
 0x1d7   : > { %1496 = vst [vmem:[%s1836_s13 + $0x18] sm:$0xff] %v1465_v31   ;;  %v1026_v35 = vmul.f32 %v985_v33, %v914_v28  ;;  %v1025_v36 = vmul.f32 %v980_v34, %v913_v29  ;;  %1151 = vst [vmem:[%s1841_s16 + $0x30] sm:$0xff] %v1135_v32 }
 0x1d8   : > { %1495 = vst [vmem:[%s1836_s13 + $0x10] sm:$0xff] %v1460_v22   ;;  %1150 = vst [vmem:[%s1841_s16 + $0x28] sm:$0xff] %v1134_v21 }
 0x1d9   : > { %1152 = vst [vmem:[%s1841_s16 + $0x38] sm:$0xff] %v1136_v30  ;;  %v1138_v39 = vadd.f32 %v1122_v57, %v1026_v35  ;;  %v1470_v40 = vpack.c.bf16 %v1026_v35, %v1025_v36  ;;  %v1137_v41 = vadd.f32 %v1121_v58, %v1025_v36 }
 0x1da   : > { %v995_v42 = vpop.permute.xlu1 %994  ;;  %v990_v43 = vpop.permute.xlu0 %989 }
 0x1db   : > { %1497 = vst [vmem:[%s1836_s13 + $0x20] sm:$0xff] %v1470_v40   ;;  %v1028_v44 = vmul.f32 %v995_v42, %v916_v37  ;;  %v1027_v45 = vmul.f32 %v990_v43, %v915_v38  ;;  %1153 = vst [vmem:[%s1841_s16 + $0x40] sm:$0xff] %v1137_v41 }
 0x1dc   : > { %1154 = vst [vmem:[%s1841_s16 + $0x48] sm:$0xff] %v1138_v39 }
 0x1dd   : > { %v1140_v48 = vadd.f32 %v1906_v61, %v1028_v44  ;;  %v1475_v49 = vpack.c.bf16 %v1028_v44, %v1027_v45  ;;  %v1139_v50 = vadd.f32 %v1909_v62, %v1027_v45 }
 0x1de   : > { %v1005_v51 = vpop.permute.xlu1 %1004  ;;  %v1000_v52 = vpop.permute.xlu0 %999 }
 0x1df   : > { %1498 = vst [vmem:[%s1836_s13 + $0x28] sm:$0xff] %v1475_v49   ;;  %v1030_v53 = vmul.f32 %v1005_v51, %v918_v46  ;;  %v1029_v54 = vmul.f32 %v1000_v52, %v917_v47  ;;  %1155 = vst [vmem:[%s1841_s16 + $0x50] sm:$0xff] %v1139_v50 }
 0x1e0   : > { %1156 = vst [vmem:[%s1841_s16 + $0x58] sm:$0xff] %v1140_v48 }
 0x1e1   : > { %v1142_v57 = vadd.f32 %v1912_v63, %v1030_v53  ;;  %v1480_v58 = vpack.c.bf16 %v1030_v53, %v1029_v54  ;;  %v1141_v59 = vadd.f32 %v1915_v0, %v1029_v54 }
 0x1e2   : > { %v1015_v60 = vpop.permute.xlu1 %1014 }
 0x1e3   : > { %1499 = vst [vmem:[%s1836_s13 + $0x30] sm:$0xff] %v1480_v58   ;;  %v1032_v62 = vmul.f32 %v1015_v60, %v920_v55  ;;  %1157 = vst [vmem:[%s1841_s16 + $0x60] sm:$0xff] %v1141_v59 }
 0x1e4   : > { %1158 = vst [vmem:[%s1841_s16 + $0x68] sm:$0xff] %v1142_v57 }
 0x1e5   : > { %v1144_v4 = vadd.f32 %v1918_v1, %v1032_v62 }
 0x1e7   : > { %1160 = vst [vmem:[%s1841_s16 + $0x78] sm:$0xff] %v1144_v4 }
 0x23f   : > { %v1010_v61 = vpop.permute.xlu0 %1009 }
 0x240   : > { %v1031_v3 = vmul.f32 %v1010_v61, %v919_v56 }
 0x242   : > { %v1485_v5 = vpack.c.bf16 %v1032_v62, %v1031_v3  ;;  %v1143_v6 = vadd.f32 %v1921_v2, %v1031_v3 }
 0x244   : > { %1500 = vst [vmem:[%s1836_s13 + $0x38] sm:$0xff] %v1485_v5   ;;  %1159 = vst [vmem:[%s1841_s16 + $0x70] sm:$0xff] %v1143_v6 }
 0x245 PF: > { %s17_s27 = sadd.s32 1, %s1690_s27   ;;  %s1985_s0 = sld [smem:[#allocation4_spill]] }
 0x246   : > { %p14_p0 = scmp.ge.s32.totalorder %s17_s27, 6   ;;  %s1986_s21 = smov %s1670_s22 }
 0x247   : > { %s1987_s22 = smov %s1781_s10  ;;  %s1988_s23 = smov %s1682_s25 }
 0x248   : > { %s1989_s24 = smov %s1686_s26  ;;  %s1990_s25 = smov %s1993_s28 }
 0x249   :  { %16 = sbr.rel (!%p14_p0) target bundleno = 6 (0x6), region = 148 }
 0x24b   : > { %s1991_s26 = smov %s1985_s0 }

</bundles_post_ra>
